<compile_context>
chip_gen: v7x
topology: tpu7x:2x2x1
jax: 0.10.0
libtpu: 0.0.40
codegen_flags: <defaults>
</compile_context>

<pallas_src>
import jax
import jax.numpy as jnp
from jax.experimental import pallas as pl
from jax.experimental.pallas import tpu as pltpu


def _round_up(v, m):
    return (v + m - 1) // m * m


# --------------------------------------------------------------------------- #
# Kernel
# --------------------------------------------------------------------------- #
def _fused_conv_block_kernel(xm_ref, xt_ref, xb_ref, w1_ref, b1_ref, w2_ref,
                             b2_ref, o_ref, xp1, xp2):
    """One (batch, row-strip) grid step of (conv3x3 + folded BN + ReLU) x 2.

    xm_ref: (1, TH, W, Cin)   current input row strip (auto-pipelined)
    xt_ref: (1, 2,  W, Cin)   two rows directly above the strip (top halo)
    xb_ref: (1, 2,  W, Cin)   two rows directly below the strip (bottom halo)
    w1_ref: (9, Cin, Cop)     conv1 weights, BN scale folded, tap-major
    b1_ref: (1, Cop)          conv1 folded BN bias (f32)
    w2_ref: (9, Cop, Cop)     conv2 weights, BN scale folded
    b2_ref: (1, Cop)
    o_ref : (1, TH, W, Cop)   lane-dense (channel-padded) output strip
    xp1   : (TH+4, W+2, Cin)  zero-padded input strip (scratch)
    xp2   : (TH+2, W+2, Cop)  zero-padded conv1-output strip (scratch, f32)
    """
    s = pl.program_id(1)
    nsh = pl.num_programs(1)

    TH, W, Cin = xm_ref.shape[1], xm_ref.shape[2], xm_ref.shape[3]
    R1 = TH + 2                      # conv1 rows computed: strip + 1-row halo
    Cop = o_ref.shape[3]
    cdt = w1_ref.dtype               # MXU operand dtype (bf16 by default)

    # ---- stage 1: assemble the zero-padded input strip (targeted zeroing) --
    # Pad columns are never written by the data moves below and scratch
    # persists across grid steps, so clear them (2 columns only) every step.
    xp1[:, 0:1, :] = jnp.zeros((TH + 4, 1, Cin), xp1.dtype)
    xp1[:, W + 1:W + 2, :] = jnp.zeros((TH + 4, 1, Cin), xp1.dtype)
    xp1[2:TH + 2, 1:W + 1, :] = xm_ref[0]

    @pl.when(s > 0)
    def _():                         # top halo rows come from the image
        xp1[0:2, 1:W + 1, :] = xt_ref[0]

    @pl.when(s == 0)
    def _():                         # image border: halo rows are zero padding
        xp1[0:2, :, :] = jnp.zeros((2, W + 2, Cin), xp1.dtype)

    @pl.when(s < nsh - 1)
    def _():
        xp1[TH + 2:TH + 4, 1:W + 1, :] = xb_ref[0]

    @pl.when(s == nsh - 1)
    def _():
        xp1[TH + 2:TH + 4, :, :] = jnp.zeros((2, W + 2, Cin), xp1.dtype)

    # ---- conv1 + folded BN + ReLU: 9 tap matmuls, f32 accumulation ----------
    acc1 = None
    for kh in range(3):
        for kw in range(3):
            t = kh * 3 + kw
            lhs = xp1[kh:kh + R1, kw:kw + W, :].reshape(R1 * W, Cin).astype(cdt)
            p = jnp.dot(lhs, w1_ref[t], preferred_element_type=jnp.float32)
            acc1 = p if acc1 is None else acc1 + p
    y1 = jnp.maximum(acc1 + b1_ref[...], 0.0)          # (R1*W, Cop) f32

    # ---- stage 2: padded conv1-output strip (never leaves VMEM) -------------
    xp2[:, 0:1, :] = jnp.zeros((R1, 1, Cop), xp2.dtype)
    xp2[:, W + 1:W + 2, :] = jnp.zeros((R1, 1, Cop), xp2.dtype)
    xp2[:, 1:W + 1, :] = y1.reshape(R1, W, Cop).astype(xp2.dtype)

    # Rows that fall outside the image are conv2's zero padding, NOT
    # conv1(zero-padded input) = ReLU(bias); overwrite them at the borders.
    @pl.when(s == 0)
    def _():
        xp2[0:1, :, :] = jnp.zeros((1, W + 2, Cop), xp2.dtype)

    @pl.when(s == nsh - 1)
    def _():
        xp2[R1 - 1:R1, :, :] = jnp.zeros((1, W + 2, Cop), xp2.dtype)

    # ---- conv2 + folded BN + ReLU -------------------------------------------
    acc2 = None
    for kh in range(3):
        for kw in range(3):
            t = kh * 3 + kw
            lhs = xp2[kh:kh + TH, kw:kw + W, :].reshape(TH * W, Cop).astype(cdt)
            p = jnp.dot(lhs, w2_ref[t], preferred_element_type=jnp.float32)
            acc2 = p if acc2 is None else acc2 + p
    y2 = jnp.maximum(acc2 + b2_ref[...], 0.0)          # (TH*W, Cop) f32

    o_ref[0] = y2.reshape(TH, W, Cop).astype(o_ref.dtype)


# --------------------------------------------------------------------------- #
# VMEM accounting / strip-size selection
# --------------------------------------------------------------------------- #
def _strip_vmem_bytes(th, W, cin, cop, in_isz=4, w_isz=2):
    """Estimate VMEM for one strip: all pipeline buffers (x2) + scratch + accs."""
    r1 = th + 2
    f32 = 4
    blocks = 2 * (th * W * cin * in_isz           # main input strip
                  + 2 * (2 * W * cin * in_isz)    # top + bottom halo blocks
                  + 9 * cin * cop * w_isz         # w1
                  + 9 * cop * cop * w_isz         # w2
                  + 2 * cop * f32                 # b1 + b2
                  + th * W * cop * f32)           # output strip
    scratch = ((th + 4) * (W + 2) * cin * in_isz  # xp1
               + r1 * (W + 2) * cop * f32)        # xp2
    # conv accumulators + per-tap lhs relayout/cast (compiler-managed)
    interm = ((r1 * W * cop + th * W * cop) * f32
              + r1 * W * max(cin, cop) * (f32 + w_isz))
    return blocks + scratch + interm


def _choose_tile_rows(H, W, cin, cop, budget_bytes, in_isz=4, w_isz=2):
    """Largest row-strip height TH dividing H that fits the VMEM budget.

    TH must be even when there is more than one strip (2-row halo blocks);
    prefer TH % 8 == 0 (sublane-aligned strips).
    """
    cands = [d for d in range(2, H + 1)
             if H % d == 0 and (d % 2 == 0 or d == H)]
    if not cands:
        cands = [H]
    for group in ([d for d in cands if d % 8 == 0], cands):
        fit = [d for d in group
               if _strip_vmem_bytes(d, W, cin, cop, in_isz, w_isz)
               <= budget_bytes]
        if fit:
            return max(fit)
    return min(cands)   # best effort; wrapper raises vmem_limit to match


# --------------------------------------------------------------------------- #
# Wrapper
# --------------------------------------------------------------------------- #
def _fold_bn(p, cin_pad, cop, eps, compute_dtype):
    """Fold eval-mode BN into the conv: w' = w*scale, b' = beta - mean*scale."""
    scale = p["gamma"] / jnp.sqrt(p["var"] + eps)
    w = p["w"] * scale[None, None, None, :]
    b = p["beta"] - p["mean"] * scale
    _, _, cin, cout = p["w"].shape
    w = jnp.pad(w, ((0, 0), (0, 0), (0, cin_pad - cin), (0, cop - cout)))
    b = jnp.pad(b, (0, cop - cout))
    return (w.reshape(9, cin_pad, cop).astype(compute_dtype),
            b.reshape(1, cop).astype(jnp.float32))


def basic_conv_block_nhwc(x, params, eps=1e-5, tile_rows=None,
                          vmem_budget_bytes=32 << 20, vmem_limit_bytes=None,
                          compute_dtype=jnp.bfloat16):
    """BasicConvBlock forward (num_convs=2, stride=1, dilation=1), NHWC in/out."""
    assert len(params) == 2, "fused kernel implements the default num_convs=2"
    N, H, W, Cin = x.shape
    assert H >= 2, "kernel assumes at least 2 image rows"
    Cout = params[0]["w"].shape[-1]
    Cop = _round_up(Cout, 128)             # lane-dense matmul-N / store width

    w1, b1 = _fold_bn(params[0], Cin, Cop, eps, compute_dtype)
    w2, b2 = _fold_bn(params[1], Cop, Cop, eps, compute_dtype)

    x_isz = x.dtype.itemsize
    w_isz = jnp.dtype(compute_dtype).itemsize
    if tile_rows is None:
        TH = _choose_tile_rows(H, W, Cin, Cop, vmem_budget_bytes, x_isz, w_isz)
    else:
        TH = tile_rows
    assert 2 <= TH <= H and H % TH == 0 and (TH % 2 == 0 or TH == H), (TH, H)
    nsh = H // TH
    thh = TH // 2                          # halo blocks are 2 rows tall
    hb_last = H // 2 - 1                   # last 2-row block index along H

    if vmem_limit_bytes is None:
        need = _strip_vmem_bytes(TH, W, Cin, Cop, x_isz, w_isz)
        vmem_limit_bytes = max(vmem_budget_bytes, need) + (16 << 20)

    grid_spec = pltpu.PrefetchScalarGridSpec(
        num_scalar_prefetch=0,
        grid=(N, nsh),
        in_specs=[
            # streamed row strip + 2-row halos (all auto double-buffered)
            pl.BlockSpec((1, TH, W, Cin), lambda n, s: (n, s, 0, 0)),
            pl.BlockSpec((1, 2, W, Cin),
                         lambda n, s: (n, jnp.maximum(s * thh - 1, 0), 0, 0)),
            pl.BlockSpec((1, 2, W, Cin),
                         lambda n, s: (n, jnp.minimum((s + 1) * thh, hb_last),
                                       0, 0)),
            # grid-invariant weights / biases
            # TODO(synk): pipeline_mode=pl.Buffered(1) would drop their second
            #             pipeline buffer (pure VMEM saving).
            pl.BlockSpec((9, Cin, Cop), lambda n, s: (0, 0, 0)),
            pl.BlockSpec((1, Cop), lambda n, s: (0, 0)),
            pl.BlockSpec((9, Cop, Cop), lambda n, s: (0, 0, 0)),
            pl.BlockSpec((1, Cop), lambda n, s: (0, 0)),
        ],
        out_specs=pl.BlockSpec((1, TH, W, Cop), lambda n, s: (n, s, 0, 0)),
        scratch_shapes=[
            pltpu.VMEM((TH + 4, W + 2, Cin), x.dtype),      # padded input strip
            pltpu.VMEM((TH + 2, W + 2, Cop), jnp.float32),  # padded conv1 out
        ],
    )

    out_padded = pl.pallas_call(
        _fused_conv_block_kernel,
        out_shape=jax.ShapeDtypeStruct((N, H, W, Cop), x.dtype),
        grid_spec=grid_spec,
        compiler_params=pltpu.CompilerParams(
            dimension_semantics=("parallel", "parallel"),
            vmem_limit_bytes=int(vmem_limit_bytes)),
    )(x, x, x, w1, b1, w2, b2)

    return out_padded[..., :Cout] if Cop != Cout else out_padded


def basic_conv_block(x_nchw, params, **kwargs):
    """NCHW wrapper matching the PyTorch module's layout."""
    # TODO(synk): run the surrounding network in NHWC to drop these two
    #             full-tensor HBM transpose passes.
    x = jnp.transpose(x_nchw, (0, 2, 3, 1))                  # NCHW -> NHWC
    out = basic_conv_block_nhwc(x, params, **kwargs)
    return jnp.transpose(out, (0, 3, 1, 2))                  # NHWC -> NCHW


# --------------------------------------------------------------------------- #
# Params / reference / demo
# --------------------------------------------------------------------------- #
def init_basic_conv_block_params(key, in_channels, out_channels, num_convs=2):
    """Deterministic parameter init mirroring BasicConvBlock.__init__ shapes."""
    params = []
    for i in range(num_convs):
        cin = in_channels if i == 0 else out_channels
        key, kw, kg, kb, km, kv = jax.random.split(key, 6)
        params.append(dict(
            w=jax.random.normal(kw, (3, 3, cin, out_channels), jnp.float32) * 0.1,
            gamma=1.0 + 0.1 * jax.random.normal(kg, (out_channels,), jnp.float32),
            beta=0.1 * jax.random.normal(kb, (out_channels,), jnp.float32),
            mean=0.1 * jax.random.normal(km, (out_channels,), jnp.float32),
            var=jnp.abs(jax.random.normal(kv, (out_channels,), jnp.float32)) + 0.5,
        ))
    return params


def _reference(x_nchw, params, eps=1e-5):
    """Pure-JAX f32 reference (lax conv) for correctness checking."""
    x = jnp.transpose(x_nchw, (0, 2, 3, 1))
    for p in params:
        y = jax.lax.conv_general_dilated(
            x, p["w"], window_strides=(1, 1), padding=((1, 1), (1, 1)),
            dimension_numbers=("NHWC", "HWIO", "NHWC"))
        scale = p["gamma"] / jnp.sqrt(p["var"] + eps)
        bias = p["beta"] - p["mean"] * scale
        x = jnp.maximum(y * scale + bias, 0.0)
    return jnp.transpose(x, (0, 3, 1, 2))


if __name__ == "__main__":
    key = jax.random.PRNGKey(0)
    key, kx = jax.random.split(key)

    N, Cin, Cout, H, W = 2, 4, 8, 16, 16
    x = jax.random.normal(kx, (N, Cin, H, W), jnp.float32)
    params = init_basic_conv_block_params(key, Cin, Cout, num_convs=2)

    ref = _reference(x, params)

    # f32 compute path (exact match): exercises halo exchange + border zeroing
    # with 2 row strips per image.
    out_f32 = jax.block_until_ready(
        basic_conv_block(x, params, tile_rows=8, compute_dtype=jnp.float32))
    assert out_f32.shape == (N, Cout, H, W), out_f32.shape
    err_f32 = float(jnp.max(jnp.abs(out_f32 - ref)))
    assert err_f32 < 1e-4, f"f32 path mismatch: {err_f32}"

    # Default bf16 MXU path, 2 strips (looser tolerance vs the f32 reference).
    out_bf = jax.block_until_ready(basic_conv_block(x, params, tile_rows=8))
    err_bf = float(jnp.max(jnp.abs(out_bf - ref)))
    assert err_bf < 1e-1, f"bf16 path mismatch: {err_bf}"

    # Auto strip size (single strip here): covers the nsh == 1 path.
    out_auto = jax.block_until_ready(basic_conv_block(x, params))
    err_auto = float(jnp.max(jnp.abs(out_auto - ref)))
    assert err_auto < 1e-1, f"auto-tile path mismatch: {err_auto}"

    print("KERNEL_OK")
</pallas_src>

<mosaic_0001>
module attributes {stable_mosaic.version = 11 : i64} {
  func.func @_fused_conv_block_kernel(%arg0: i32, %arg1: i32, %arg2: memref<1x8x16x4xf32, #tpu.memory_space<vmem>>, %arg3: memref<1x2x16x4xf32, #tpu.memory_space<vmem>>, %arg4: memref<1x2x16x4xf32, #tpu.memory_space<vmem>>, %arg5: memref<9x4x128xf32, #tpu.memory_space<vmem>>, %arg6: memref<1x128xf32, #tpu.memory_space<vmem>>, %arg7: memref<9x128x128xf32, #tpu.memory_space<vmem>>, %arg8: memref<1x128xf32, #tpu.memory_space<vmem>>, %arg9: memref<1x8x16x128xf32, #tpu.memory_space<vmem>>, %arg10: memref<12x18x4xf32, #tpu.memory_space<vmem>>, %arg11: memref<10x18x128xf32, #tpu.memory_space<vmem>>) attributes {dimension_semantics = [#tpu.dimension_semantics<parallel>, #tpu.dimension_semantics<parallel>], iteration_bounds = array<i64: 2, 2>, scalar_prefetch = 0 : i64, scratch_operands = 2 : i64, tpu.core_type = #tpu.core_type<tc>, window_params = [{transform_indices = @transform_0, window_bounds = array<i64: 1, 8, 16, 4>}, {transform_indices = @transform_1, window_bounds = array<i64: 1, 2, 16, 4>}, {transform_indices = @transform_2, window_bounds = array<i64: 1, 2, 16, 4>}, {pipeline_mode = #tpu.pipeline_mode<synchronous>, transform_indices = @transform_3, window_bounds = array<i64: 9, 4, 128>}, {pipeline_mode = #tpu.pipeline_mode<synchronous>, transform_indices = @transform_4, window_bounds = array<i64: 1, 128>}, {pipeline_mode = #tpu.pipeline_mode<synchronous>, transform_indices = @transform_5, window_bounds = array<i64: 9, 128, 128>}, {pipeline_mode = #tpu.pipeline_mode<synchronous>, transform_indices = @transform_6, window_bounds = array<i64: 1, 128>}, {transform_indices = @transform_7, window_bounds = array<i64: 1, 8, 16, 128>}]} {
    %cst = arith.constant 0.000000e+00 : f32
    %0 = vector.broadcast %cst : f32 to vector<12x1x4xf32>
    %c0 = arith.constant 0 : index
    %c0_0 = arith.constant 0 : index
    %c0_1 = arith.constant 0 : index
    %1 = vector.load %arg10[%c0, %c0_0, %c0_1] : memref<12x18x4xf32, #tpu.memory_space<vmem>>, vector<12x1x4xf32>
    tpu.vector_store %arg10[%c0, %c0_0, %c0_1], %0 {strides = array<i32>} : memref<12x18x4xf32, #tpu.memory_space<vmem>>, vector<12x1x4xf32>,
    %cst_2 = arith.constant 0.000000e+00 : f32
    %2 = vector.broadcast %cst_2 : f32 to vector<12x1x4xf32>
    %c0_3 = arith.constant 0 : index
    %c17 = arith.constant 17 : index
    %c0_4 = arith.constant 0 : index
    %3 = vector.load %arg10[%c0_3, %c17, %c0_4] : memref<12x18x4xf32, #tpu.memory_space<vmem>>, vector<12x1x4xf32>
    tpu.vector_store %arg10[%c0_3, %c17, %c0_4], %2 {strides = array<i32>} : memref<12x18x4xf32, #tpu.memory_space<vmem>>, vector<12x1x4xf32>,
    %c0_5 = arith.constant 0 : index
    %c0_6 = arith.constant 0 : index
    %c0_7 = arith.constant 0 : index
    %c0_8 = arith.constant 0 : index
    %4 = vector.load %arg2[%c0_5, %c0_6, %c0_7, %c0_8] : memref<1x8x16x4xf32, #tpu.memory_space<vmem>>, vector<1x8x16x4xf32>
    %5 = vector.shape_cast %4 : vector<1x8x16x4xf32> to vector<8x16x4xf32>
    %c2 = arith.constant 2 : index
    %c1 = arith.constant 1 : index
    %c0_9 = arith.constant 0 : index
    %6 = vector.load %arg10[%c2, %c1, %c0_9] : memref<12x18x4xf32, #tpu.memory_space<vmem>>, vector<8x16x4xf32>
    tpu.vector_store %arg10[%c2, %c1, %c0_9], %5 {strides = array<i32>} : memref<12x18x4xf32, #tpu.memory_space<vmem>>, vector<8x16x4xf32>,
    %c0_i32 = arith.constant 0 : i32
    %7 = arith.cmpi sgt, %arg1, %c0_i32 : i32
    %8 = arith.extui %7 : i1 to i32
    %c0_i32_10 = arith.constant 0 : i32
    %9 = arith.cmpi ne, %8, %c0_i32_10 : i32
    scf.if %9 {
      %c0_161 = arith.constant 0 : index
      %c0_162 = arith.constant 0 : index
      %c0_163 = arith.constant 0 : index
      %c0_164 = arith.constant 0 : index
      %151 = vector.load %arg3[%c0_161, %c0_162, %c0_163, %c0_164] : memref<1x2x16x4xf32, #tpu.memory_space<vmem>>, vector<1x2x16x4xf32>
      %152 = vector.shape_cast %151 : vector<1x2x16x4xf32> to vector<2x16x4xf32>
      %c0_165 = arith.constant 0 : index
      %c1_166 = arith.constant 1 : index
      %c0_167 = arith.constant 0 : index
      %153 = vector.load %arg10[%c0_165, %c1_166, %c0_167] : memref<12x18x4xf32, #tpu.memory_space<vmem>>, vector<2x16x4xf32>
      tpu.vector_store %arg10[%c0_165, %c1_166, %c0_167], %152 {strides = array<i32>} : memref<12x18x4xf32, #tpu.memory_space<vmem>>, vector<2x16x4xf32>,
    } else {
    }
    %c0_i32_11 = arith.constant 0 : i32
    %10 = arith.cmpi eq, %arg1, %c0_i32_11 : i32
    %11 = arith.extui %10 : i1 to i32
    %c0_i32_12 = arith.constant 0 : i32
    %12 = arith.cmpi ne, %11, %c0_i32_12 : i32
    scf.if %12 {
      %cst_161 = arith.constant 0.000000e+00 : f32
      %151 = vector.broadcast %cst_161 : f32 to vector<2x18x4xf32>
      %c0_162 = arith.constant 0 : index
      %c0_163 = arith.constant 0 : index
      %c0_164 = arith.constant 0 : index
      %152 = vector.load %arg10[%c0_162, %c0_163, %c0_164] : memref<12x18x4xf32, #tpu.memory_space<vmem>>, vector<2x18x4xf32>
      tpu.vector_store %arg10[%c0_162, %c0_163, %c0_164], %151 {strides = array<i32>} : memref<12x18x4xf32, #tpu.memory_space<vmem>>, vector<2x18x4xf32>,
    } else {
    }
    %c1_i32 = arith.constant 1 : i32
    %13 = arith.cmpi slt, %arg1, %c1_i32 : i32
    %14 = arith.extui %13 : i1 to i32
    %c0_i32_13 = arith.constant 0 : i32
    %15 = arith.cmpi ne, %14, %c0_i32_13 : i32
    scf.if %15 {
      %c0_161 = arith.constant 0 : index
      %c0_162 = arith.constant 0 : index
      %c0_163 = arith.constant 0 : index
      %c0_164 = arith.constant 0 : index
      %151 = vector.load %arg4[%c0_161, %c0_162, %c0_163, %c0_164] : memref<1x2x16x4xf32, #tpu.memory_space<vmem>>, vector<1x2x16x4xf32>
      %152 = vector.shape_cast %151 : vector<1x2x16x4xf32> to vector<2x16x4xf32>
      %c10 = arith.constant 10 : index
      %c1_165 = arith.constant 1 : index
      %c0_166 = arith.constant 0 : index
      %153 = vector.load %arg10[%c10, %c1_165, %c0_166] : memref<12x18x4xf32, #tpu.memory_space<vmem>>, vector<2x16x4xf32>
      tpu.vector_store %arg10[%c10, %c1_165, %c0_166], %152 {strides = array<i32>} : memref<12x18x4xf32, #tpu.memory_space<vmem>>, vector<2x16x4xf32>,
    } else {
    }
    %c1_i32_14 = arith.constant 1 : i32
    %16 = arith.cmpi eq, %arg1, %c1_i32_14 : i32
    %17 = arith.extui %16 : i1 to i32
    %c0_i32_15 = arith.constant 0 : i32
    %18 = arith.cmpi ne, %17, %c0_i32_15 : i32
    scf.if %18 {
      %cst_161 = arith.constant 0.000000e+00 : f32
      %151 = vector.broadcast %cst_161 : f32 to vector<2x18x4xf32>
      %c10 = arith.constant 10 : index
      %c0_162 = arith.constant 0 : index
      %c0_163 = arith.constant 0 : index
      %152 = vector.load %arg10[%c10, %c0_162, %c0_163] : memref<12x18x4xf32, #tpu.memory_space<vmem>>, vector<2x18x4xf32>
      tpu.vector_store %arg10[%c10, %c0_162, %c0_163], %151 {strides = array<i32>} : memref<12x18x4xf32, #tpu.memory_space<vmem>>, vector<2x18x4xf32>,
    } else {
    }
    %c0_16 = arith.constant 0 : index
    %c0_17 = arith.constant 0 : index
    %c0_18 = arith.constant 0 : index
    %19 = vector.load %arg10[%c0_16, %c0_17, %c0_18] : memref<12x18x4xf32, #tpu.memory_space<vmem>>, vector<10x16x4xf32>
    %20 = vector.shape_cast %19 : vector<10x16x4xf32> to vector<160x4xf32>
    %c0_19 = arith.constant 0 : index
    %c0_20 = arith.constant 0 : index
    %c0_21 = arith.constant 0 : index
    %21 = vector.load %arg5[%c0_19, %c0_20, %c0_21] : memref<9x4x128xf32, #tpu.memory_space<vmem>>, vector<1x4x128xf32>
    %22 = vector.shape_cast %21 : vector<1x4x128xf32> to vector<4x128xf32>
    %cst_22 = arith.constant dense<0.000000e+00> : vector<160x128xf32>
    %23 = tpu.matmul %20, %22, %cst_22 {dimension_numbers = #tpu.dot_dimension_numbers<[1], [0], [0], [1], [0, 0, 1, 1], [], []>} : vector<160x4xf32>, vector<4x128xf32>, vector<160x128xf32> -> vector<160x128xf32>
    %c0_23 = arith.constant 0 : index
    %c1_24 = arith.constant 1 : index
    %c0_25 = arith.constant 0 : index
    %24 = vector.load %arg10[%c0_23, %c1_24, %c0_25] : memref<12x18x4xf32, #tpu.memory_space<vmem>>, vector<10x16x4xf32>
    %25 = vector.shape_cast %24 : vector<10x16x4xf32> to vector<160x4xf32>
    %c1_26 = arith.constant 1 : index
    %c0_27 = arith.constant 0 : index
    %c0_28 = arith.constant 0 : index
    %26 = vector.load %arg5[%c1_26, %c0_27, %c0_28] : memref<9x4x128xf32, #tpu.memory_space<vmem>>, vector<1x4x128xf32>
    %27 = vector.shape_cast %26 : vector<1x4x128xf32> to vector<4x128xf32>
    %cst_29 = arith.constant dense<0.000000e+00> : vector<160x128xf32>
    %28 = tpu.matmul %25, %27, %cst_29 {dimension_numbers = #tpu.dot_dimension_numbers<[1], [0], [0], [1], [0, 0, 1, 1], [], []>} : vector<160x4xf32>, vector<4x128xf32>, vector<160x128xf32> -> vector<160x128xf32>
    %29 = arith.addf %23, %28 : vector<160x128xf32>
    %c0_30 = arith.constant 0 : index
    %c2_31 = arith.constant 2 : index
    %c0_32 = arith.constant 0 : index
    %30 = vector.load %arg10[%c0_30, %c2_31, %c0_32] : memref<12x18x4xf32, #tpu.memory_space<vmem>>, vector<10x16x4xf32>
    %31 = vector.shape_cast %30 : vector<10x16x4xf32> to vector<160x4xf32>
    %c2_33 = arith.constant 2 : index
    %c0_34 = arith.constant 0 : index
    %c0_35 = arith.constant 0 : index
    %32 = vector.load %arg5[%c2_33, %c0_34, %c0_35] : memref<9x4x128xf32, #tpu.memory_space<vmem>>, vector<1x4x128xf32>
    %33 = vector.shape_cast %32 : vector<1x4x128xf32> to vector<4x128xf32>
    %cst_36 = arith.constant dense<0.000000e+00> : vector<160x128xf32>
    %34 = tpu.matmul %31, %33, %cst_36 {dimension_numbers = #tpu.dot_dimension_numbers<[1], [0], [0], [1], [0, 0, 1, 1], [], []>} : vector<160x4xf32>, vector<4x128xf32>, vector<160x128xf32> -> vector<160x128xf32>
    %35 = arith.addf %29, %34 : vector<160x128xf32>
    %c1_37 = arith.constant 1 : index
    %c0_38 = arith.constant 0 : index
    %c0_39 = arith.constant 0 : index
    %36 = vector.load %arg10[%c1_37, %c0_38, %c0_39] : memref<12x18x4xf32, #tpu.memory_space<vmem>>, vector<10x16x4xf32>
    %37 = vector.shape_cast %36 : vector<10x16x4xf32> to vector<160x4xf32>
    %c3 = arith.constant 3 : index
    %c0_40 = arith.constant 0 : index
    %c0_41 = arith.constant 0 : index
    %38 = vector.load %arg5[%c3, %c0_40, %c0_41] : memref<9x4x128xf32, #tpu.memory_space<vmem>>, vector<1x4x128xf32>
    %39 = vector.shape_cast %38 : vector<1x4x128xf32> to vector<4x128xf32>
    %cst_42 = arith.constant dense<0.000000e+00> : vector<160x128xf32>
    %40 = tpu.matmul %37, %39, %cst_42 {dimension_numbers = #tpu.dot_dimension_numbers<[1], [0], [0], [1], [0, 0, 1, 1], [], []>} : vector<160x4xf32>, vector<4x128xf32>, vector<160x128xf32> -> vector<160x128xf32>
    %41 = arith.addf %35, %40 : vector<160x128xf32>
    %c1_43 = arith.constant 1 : index
    %c1_44 = arith.constant 1 : index
    %c0_45 = arith.constant 0 : index
    %42 = vector.load %arg10[%c1_43, %c1_44, %c0_45] : memref<12x18x4xf32, #tpu.memory_space<vmem>>, vector<10x16x4xf32>
    %43 = vector.shape_cast %42 : vector<10x16x4xf32> to vector<160x4xf32>
    %c4 = arith.constant 4 : index
    %c0_46 = arith.constant 0 : index
    %c0_47 = arith.constant 0 : index
    %44 = vector.load %arg5[%c4, %c0_46, %c0_47] : memref<9x4x128xf32, #tpu.memory_space<vmem>>, vector<1x4x128xf32>
    %45 = vector.shape_cast %44 : vector<1x4x128xf32> to vector<4x128xf32>
    %cst_48 = arith.constant dense<0.000000e+00> : vector<160x128xf32>
    %46 = tpu.matmul %43, %45, %cst_48 {dimension_numbers = #tpu.dot_dimension_numbers<[1], [0], [0], [1], [0, 0, 1, 1], [], []>} : vector<160x4xf32>, vector<4x128xf32>, vector<160x128xf32> -> vector<160x128xf32>
    %47 = arith.addf %41, %46 : vector<160x128xf32>
    %c1_49 = arith.constant 1 : index
    %c2_50 = arith.constant 2 : index
    %c0_51 = arith.constant 0 : index
    %48 = vector.load %arg10[%c1_49, %c2_50, %c0_51] : memref<12x18x4xf32, #tpu.memory_space<vmem>>, vector<10x16x4xf32>
    %49 = vector.shape_cast %48 : vector<10x16x4xf32> to vector<160x4xf32>
    %c5 = arith.constant 5 : index
    %c0_52 = arith.constant 0 : index
    %c0_53 = arith.constant 0 : index
    %50 = vector.load %arg5[%c5, %c0_52, %c0_53] : memref<9x4x128xf32, #tpu.memory_space<vmem>>, vector<1x4x128xf32>
    %51 = vector.shape_cast %50 : vector<1x4x128xf32> to vector<4x128xf32>
    %cst_54 = arith.constant dense<0.000000e+00> : vector<160x128xf32>
    %52 = tpu.matmul %49, %51, %cst_54 {dimension_numbers = #tpu.dot_dimension_numbers<[1], [0], [0], [1], [0, 0, 1, 1], [], []>} : vector<160x4xf32>, vector<4x128xf32>, vector<160x128xf32> -> vector<160x128xf32>
    %53 = arith.addf %47, %52 : vector<160x128xf32>
    %c2_55 = arith.constant 2 : index
    %c0_56 = arith.constant 0 : index
    %c0_57 = arith.constant 0 : index
    %54 = vector.load %arg10[%c2_55, %c0_56, %c0_57] : memref<12x18x4xf32, #tpu.memory_space<vmem>>, vector<10x16x4xf32>
    %55 = vector.shape_cast %54 : vector<10x16x4xf32> to vector<160x4xf32>
    %c6 = arith.constant 6 : index
    %c0_58 = arith.constant 0 : index
    %c0_59 = arith.constant 0 : index
    %56 = vector.load %arg5[%c6, %c0_58, %c0_59] : memref<9x4x128xf32, #tpu.memory_space<vmem>>, vector<1x4x128xf32>
    %57 = vector.shape_cast %56 : vector<1x4x128xf32> to vector<4x128xf32>
    %cst_60 = arith.constant dense<0.000000e+00> : vector<160x128xf32>
    %58 = tpu.matmul %55, %57, %cst_60 {dimension_numbers = #tpu.dot_dimension_numbers<[1], [0], [0], [1], [0, 0, 1, 1], [], []>} : vector<160x4xf32>, vector<4x128xf32>, vector<160x128xf32> -> vector<160x128xf32>
    %59 = arith.addf %53, %58 : vector<160x128xf32>
    %c2_61 = arith.constant 2 : index
    %c1_62 = arith.constant 1 : index
    %c0_63 = arith.constant 0 : index
    %60 = vector.load %arg10[%c2_61, %c1_62, %c0_63] : memref<12x18x4xf32, #tpu.memory_space<vmem>>, vector<10x16x4xf32>
    %61 = vector.shape_cast %60 : vector<10x16x4xf32> to vector<160x4xf32>
    %c7 = arith.constant 7 : index
    %c0_64 = arith.constant 0 : index
    %c0_65 = arith.constant 0 : index
    %62 = vector.load %arg5[%c7, %c0_64, %c0_65] : memref<9x4x128xf32, #tpu.memory_space<vmem>>, vector<1x4x128xf32>
    %63 = vector.shape_cast %62 : vector<1x4x128xf32> to vector<4x128xf32>
    %cst_66 = arith.constant dense<0.000000e+00> : vector<160x128xf32>
    %64 = tpu.matmul %61, %63, %cst_66 {dimension_numbers = #tpu.dot_dimension_numbers<[1], [0], [0], [1], [0, 0, 1, 1], [], []>} : vector<160x4xf32>, vector<4x128xf32>, vector<160x128xf32> -> vector<160x128xf32>
    %65 = arith.addf %59, %64 : vector<160x128xf32>
    %c2_67 = arith.constant 2 : index
    %c2_68 = arith.constant 2 : index
    %c0_69 = arith.constant 0 : index
    %66 = vector.load %arg10[%c2_67, %c2_68, %c0_69] : memref<12x18x4xf32, #tpu.memory_space<vmem>>, vector<10x16x4xf32>
    %67 = vector.shape_cast %66 : vector<10x16x4xf32> to vector<160x4xf32>
    %c8 = arith.constant 8 : index
    %c0_70 = arith.constant 0 : index
    %c0_71 = arith.constant 0 : index
    %68 = vector.load %arg5[%c8, %c0_70, %c0_71] : memref<9x4x128xf32, #tpu.memory_space<vmem>>, vector<1x4x128xf32>
    %69 = vector.shape_cast %68 : vector<1x4x128xf32> to vector<4x128xf32>
    %cst_72 = arith.constant dense<0.000000e+00> : vector<160x128xf32>
    %70 = tpu.matmul %67, %69, %cst_72 {dimension_numbers = #tpu.dot_dimension_numbers<[1], [0], [0], [1], [0, 0, 1, 1], [], []>} : vector<160x4xf32>, vector<4x128xf32>, vector<160x128xf32> -> vector<160x128xf32>
    %71 = arith.addf %65, %70 : vector<160x128xf32>
    %c0_73 = arith.constant 0 : index
    %c0_74 = arith.constant 0 : index
    %72 = vector.load %arg6[%c0_73, %c0_74] : memref<1x128xf32, #tpu.memory_space<vmem>>, vector<1x128xf32>
    %73 = vector.broadcast %72 : vector<1x128xf32> to vector<160x128xf32>
    %74 = arith.addf %71, %73 : vector<160x128xf32>
    %cst_75 = arith.constant 0.000000e+00 : f32
    %75 = vector.broadcast %cst_75 : f32 to vector<160x128xf32>
    %76 = arith.maximumf %74, %75 : vector<160x128xf32>
    %cst_76 = arith.constant 0.000000e+00 : f32
    %77 = vector.broadcast %cst_76 : f32 to vector<10x1x128xf32>
    %c0_77 = arith.constant 0 : index
    %c0_78 = arith.constant 0 : index
    %c0_79 = arith.constant 0 : index
    %78 = vector.load %arg11[%c0_77, %c0_78, %c0_79] : memref<10x18x128xf32, #tpu.memory_space<vmem>>, vector<10x1x128xf32>
    tpu.vector_store %arg11[%c0_77, %c0_78, %c0_79], %77 {strides = array<i32>} : memref<10x18x128xf32, #tpu.memory_space<vmem>>, vector<10x1x128xf32>,
    %cst_80 = arith.constant 0.000000e+00 : f32
    %79 = vector.broadcast %cst_80 : f32 to vector<10x1x128xf32>
    %c0_81 = arith.constant 0 : index
    %c17_82 = arith.constant 17 : index
    %c0_83 = arith.constant 0 : index
    %80 = vector.load %arg11[%c0_81, %c17_82, %c0_83] : memref<10x18x128xf32, #tpu.memory_space<vmem>>, vector<10x1x128xf32>
    tpu.vector_store %arg11[%c0_81, %c17_82, %c0_83], %79 {strides = array<i32>} : memref<10x18x128xf32, #tpu.memory_space<vmem>>, vector<10x1x128xf32>,
    %81 = vector.shape_cast %76 : vector<160x128xf32> to vector<10x16x128xf32>
    %c0_84 = arith.constant 0 : index
    %c1_85 = arith.constant 1 : index
    %c0_86 = arith.constant 0 : index
    %82 = vector.load %arg11[%c0_84, %c1_85, %c0_86] : memref<10x18x128xf32, #tpu.memory_space<vmem>>, vector<10x16x128xf32>
    tpu.vector_store %arg11[%c0_84, %c1_85, %c0_86], %81 {strides = array<i32>} : memref<10x18x128xf32, #tpu.memory_space<vmem>>, vector<10x16x128xf32>,
    %c0_i32_87 = arith.constant 0 : i32
    %83 = arith.cmpi eq, %arg1, %c0_i32_87 : i32
    %84 = arith.extui %83 : i1 to i32
    %c0_i32_88 = arith.constant 0 : i32
    %85 = arith.cmpi ne, %84, %c0_i32_88 : i32
    scf.if %85 {
      %cst_161 = arith.constant 0.000000e+00 : f32
      %151 = vector.broadcast %cst_161 : f32 to vector<1x18x128xf32>
      %c0_162 = arith.constant 0 : index
      %c0_163 = arith.constant 0 : index
      %c0_164 = arith.constant 0 : index
      %152 = vector.load %arg11[%c0_162, %c0_163, %c0_164] : memref<10x18x128xf32, #tpu.memory_space<vmem>>, vector<1x18x128xf32>
      tpu.vector_store %arg11[%c0_162, %c0_163, %c0_164], %151 {strides = array<i32>} : memref<10x18x128xf32, #tpu.memory_space<vmem>>, vector<1x18x128xf32>,
    } else {
    }
    %c1_i32_89 = arith.constant 1 : i32
    %86 = arith.cmpi eq, %arg1, %c1_i32_89 : i32
    %87 = arith.extui %86 : i1 to i32
    %c0_i32_90 = arith.constant 0 : i32
    %88 = arith.cmpi ne, %87, %c0_i32_90 : i32
    scf.if %88 {
      %cst_161 = arith.constant 0.000000e+00 : f32
      %151 = vector.broadcast %cst_161 : f32 to vector<1x18x128xf32>
      %c9 = arith.constant 9 : index
      %c0_162 = arith.constant 0 : index
      %c0_163 = arith.constant 0 : index
      %152 = vector.load %arg11[%c9, %c0_162, %c0_163] : memref<10x18x128xf32, #tpu.memory_space<vmem>>, vector<1x18x128xf32>
      tpu.vector_store %arg11[%c9, %c0_162, %c0_163], %151 {strides = array<i32>} : memref<10x18x128xf32, #tpu.memory_space<vmem>>, vector<1x18x128xf32>,
    } else {
    }
    %c0_91 = arith.constant 0 : index
    %c0_92 = arith.constant 0 : index
    %c0_93 = arith.constant 0 : index
    %89 = vector.load %arg11[%c0_91, %c0_92, %c0_93] : memref<10x18x128xf32, #tpu.memory_space<vmem>>, vector<8x16x128xf32>
    %90 = vector.shape_cast %89 : vector<8x16x128xf32> to vector<128x128xf32>
    %c0_94 = arith.constant 0 : index
    %c0_95 = arith.constant 0 : index
    %c0_96 = arith.constant 0 : index
    %91 = vector.load %arg7[%c0_94, %c0_95, %c0_96] : memref<9x128x128xf32, #tpu.memory_space<vmem>>, vector<1x128x128xf32>
    %92 = vector.shape_cast %91 : vector<1x128x128xf32> to vector<128x128xf32>
    %cst_97 = arith.constant dense<0.000000e+00> : vector<128x128xf32>
    %93 = tpu.matmul %90, %92, %cst_97 {dimension_numbers = #tpu.dot_dimension_numbers<[1], [0], [0], [1], [0, 0, 1, 1], [], []>} : vector<128x128xf32>, vector<128x128xf32>, vector<128x128xf32> -> vector<128x128xf32>
    %c0_98 = arith.constant 0 : index
    %c1_99 = arith.constant 1 : index
    %c0_100 = arith.constant 0 : index
    %94 = vector.load %arg11[%c0_98, %c1_99, %c0_100] : memref<10x18x128xf32, #tpu.memory_space<vmem>>, vector<8x16x128xf32>
    %95 = vector.shape_cast %94 : vector<8x16x128xf32> to vector<128x128xf32>
    %c1_101 = arith.constant 1 : index
    %c0_102 = arith.constant 0 : index
    %c0_103 = arith.constant 0 : index
    %96 = vector.load %arg7[%c1_101, %c0_102, %c0_103] : memref<9x128x128xf32, #tpu.memory_space<vmem>>, vector<1x128x128xf32>
    %97 = vector.shape_cast %96 : vector<1x128x128xf32> to vector<128x128xf32>
    %cst_104 = arith.constant dense<0.000000e+00> : vector<128x128xf32>
    %98 = tpu.matmul %95, %97, %cst_104 {dimension_numbers = #tpu.dot_dimension_numbers<[1], [0], [0], [1], [0, 0, 1, 1], [], []>} : vector<128x128xf32>, vector<128x128xf32>, vector<128x128xf32> -> vector<128x128xf32>
    %99 = arith.addf %93, %98 : vector<128x128xf32>
    %c0_105 = arith.constant 0 : index
    %c2_106 = arith.constant 2 : index
    %c0_107 = arith.constant 0 : index
    %100 = vector.load %arg11[%c0_105, %c2_106, %c0_107] : memref<10x18x128xf32, #tpu.memory_space<vmem>>, vector<8x16x128xf32>
    %101 = vector.shape_cast %100 : vector<8x16x128xf32> to vector<128x128xf32>
    %c2_108 = arith.constant 2 : index
    %c0_109 = arith.constant 0 : index
    %c0_110 = arith.constant 0 : index
    %102 = vector.load %arg7[%c2_108, %c0_109, %c0_110] : memref<9x128x128xf32, #tpu.memory_space<vmem>>, vector<1x128x128xf32>
    %103 = vector.shape_cast %102 : vector<1x128x128xf32> to vector<128x128xf32>
    %cst_111 = arith.constant dense<0.000000e+00> : vector<128x128xf32>
    %104 = tpu.matmul %101, %103, %cst_111 {dimension_numbers = #tpu.dot_dimension_numbers<[1], [0], [0], [1], [0, 0, 1, 1], [], []>} : vector<128x128xf32>, vector<128x128xf32>, vector<128x128xf32> -> vector<128x128xf32>
    %105 = arith.addf %99, %104 : vector<128x128xf32>
    %c1_112 = arith.constant 1 : index
    %c0_113 = arith.constant 0 : index
    %c0_114 = arith.constant 0 : index
    %106 = vector.load %arg11[%c1_112, %c0_113, %c0_114] : memref<10x18x128xf32, #tpu.memory_space<vmem>>, vector<8x16x128xf32>
    %107 = vector.shape_cast %106 : vector<8x16x128xf32> to vector<128x128xf32>
    %c3_115 = arith.constant 3 : index
    %c0_116 = arith.constant 0 : index
    %c0_117 = arith.constant 0 : index
    %108 = vector.load %arg7[%c3_115, %c0_116, %c0_117] : memref<9x128x128xf32, #tpu.memory_space<vmem>>, vector<1x128x128xf32>
    %109 = vector.shape_cast %108 : vector<1x128x128xf32> to vector<128x128xf32>
    %cst_118 = arith.constant dense<0.000000e+00> : vector<128x128xf32>
    %110 = tpu.matmul %107, %109, %cst_118 {dimension_numbers = #tpu.dot_dimension_numbers<[1], [0], [0], [1], [0, 0, 1, 1], [], []>} : vector<128x128xf32>, vector<128x128xf32>, vector<128x128xf32> -> vector<128x128xf32>
    %111 = arith.addf %105, %110 : vector<128x128xf32>
    %c1_119 = arith.constant 1 : index
    %c1_120 = arith.constant 1 : index
    %c0_121 = arith.constant 0 : index
    %112 = vector.load %arg11[%c1_119, %c1_120, %c0_121] : memref<10x18x128xf32, #tpu.memory_space<vmem>>, vector<8x16x128xf32>
    %113 = vector.shape_cast %112 : vector<8x16x128xf32> to vector<128x128xf32>
    %c4_122 = arith.constant 4 : index
    %c0_123 = arith.constant 0 : index
    %c0_124 = arith.constant 0 : index
    %114 = vector.load %arg7[%c4_122, %c0_123, %c0_124] : memref<9x128x128xf32, #tpu.memory_space<vmem>>, vector<1x128x128xf32>
    %115 = vector.shape_cast %114 : vector<1x128x128xf32> to vector<128x128xf32>
    %cst_125 = arith.constant dense<0.000000e+00> : vector<128x128xf32>
    %116 = tpu.matmul %113, %115, %cst_125 {dimension_numbers = #tpu.dot_dimension_numbers<[1], [0], [0], [1], [0, 0, 1, 1], [], []>} : vector<128x128xf32>, vector<128x128xf32>, vector<128x128xf32> -> vector<128x128xf32>
    %117 = arith.addf %111, %116 : vector<128x128xf32>
    %c1_126 = arith.constant 1 : index
    %c2_127 = arith.constant 2 : index
    %c0_128 = arith.constant 0 : index
    %118 = vector.load %arg11[%c1_126, %c2_127, %c0_128] : memref<10x18x128xf32, #tpu.memory_space<vmem>>, vector<8x16x128xf32>
    %119 = vector.shape_cast %118 : vector<8x16x128xf32> to vector<128x128xf32>
    %c5_129 = arith.constant 5 : index
    %c0_130 = arith.constant 0 : index
    %c0_131 = arith.constant 0 : index
    %120 = vector.load %arg7[%c5_129, %c0_130, %c0_131] : memref<9x128x128xf32, #tpu.memory_space<vmem>>, vector<1x128x128xf32>
    %121 = vector.shape_cast %120 : vector<1x128x128xf32> to vector<128x128xf32>
    %cst_132 = arith.constant dense<0.000000e+00> : vector<128x128xf32>
    %122 = tpu.matmul %119, %121, %cst_132 {dimension_numbers = #tpu.dot_dimension_numbers<[1], [0], [0], [1], [0, 0, 1, 1], [], []>} : vector<128x128xf32>, vector<128x128xf32>, vector<128x128xf32> -> vector<128x128xf32>
    %123 = arith.addf %117, %122 : vector<128x128xf32>
    %c2_133 = arith.constant 2 : index
    %c0_134 = arith.constant 0 : index
    %c0_135 = arith.constant 0 : index
    %124 = vector.load %arg11[%c2_133, %c0_134, %c0_135] : memref<10x18x128xf32, #tpu.memory_space<vmem>>, vector<8x16x128xf32>
    %125 = vector.shape_cast %124 : vector<8x16x128xf32> to vector<128x128xf32>
    %c6_136 = arith.constant 6 : index
    %c0_137 = arith.constant 0 : index
    %c0_138 = arith.constant 0 : index
    %126 = vector.load %arg7[%c6_136, %c0_137, %c0_138] : memref<9x128x128xf32, #tpu.memory_space<vmem>>, vector<1x128x128xf32>
    %127 = vector.shape_cast %126 : vector<1x128x128xf32> to vector<128x128xf32>
    %cst_139 = arith.constant dense<0.000000e+00> : vector<128x128xf32>
    %128 = tpu.matmul %125, %127, %cst_139 {dimension_numbers = #tpu.dot_dimension_numbers<[1], [0], [0], [1], [0, 0, 1, 1], [], []>} : vector<128x128xf32>, vector<128x128xf32>, vector<128x128xf32> -> vector<128x128xf32>
    %129 = arith.addf %123, %128 : vector<128x128xf32>
    %c2_140 = arith.constant 2 : index
    %c1_141 = arith.constant 1 : index
    %c0_142 = arith.constant 0 : index
    %130 = vector.load %arg11[%c2_140, %c1_141, %c0_142] : memref<10x18x128xf32, #tpu.memory_space<vmem>>, vector<8x16x128xf32>
    %131 = vector.shape_cast %130 : vector<8x16x128xf32> to vector<128x128xf32>
    %c7_143 = arith.constant 7 : index
    %c0_144 = arith.constant 0 : index
    %c0_145 = arith.constant 0 : index
    %132 = vector.load %arg7[%c7_143, %c0_144, %c0_145] : memref<9x128x128xf32, #tpu.memory_space<vmem>>, vector<1x128x128xf32>
    %133 = vector.shape_cast %132 : vector<1x128x128xf32> to vector<128x128xf32>
    %cst_146 = arith.constant dense<0.000000e+00> : vector<128x128xf32>
    %134 = tpu.matmul %131, %133, %cst_146 {dimension_numbers = #tpu.dot_dimension_numbers<[1], [0], [0], [1], [0, 0, 1, 1], [], []>} : vector<128x128xf32>, vector<128x128xf32>, vector<128x128xf32> -> vector<128x128xf32>
    %135 = arith.addf %129, %134 : vector<128x128xf32>
    %c2_147 = arith.constant 2 : index
    %c2_148 = arith.constant 2 : index
    %c0_149 = arith.constant 0 : index
    %136 = vector.load %arg11[%c2_147, %c2_148, %c0_149] : memref<10x18x128xf32, #tpu.memory_space<vmem>>, vector<8x16x128xf32>
    %137 = vector.shape_cast %136 : vector<8x16x128xf32> to vector<128x128xf32>
    %c8_150 = arith.constant 8 : index
    %c0_151 = arith.constant 0 : index
    %c0_152 = arith.constant 0 : index
    %138 = vector.load %arg7[%c8_150, %c0_151, %c0_152] : memref<9x128x128xf32, #tpu.memory_space<vmem>>, vector<1x128x128xf32>
    %139 = vector.shape_cast %138 : vector<1x128x128xf32> to vector<128x128xf32>
    %cst_153 = arith.constant dense<0.000000e+00> : vector<128x128xf32>
    %140 = tpu.matmul %137, %139, %cst_153 {dimension_numbers = #tpu.dot_dimension_numbers<[1], [0], [0], [1], [0, 0, 1, 1], [], []>} : vector<128x128xf32>, vector<128x128xf32>, vector<128x128xf32> -> vector<128x128xf32>
    %141 = arith.addf %135, %140 : vector<128x128xf32>
    %c0_154 = arith.constant 0 : index
    %c0_155 = arith.constant 0 : index
    %142 = vector.load %arg8[%c0_154, %c0_155] : memref<1x128xf32, #tpu.memory_space<vmem>>, vector<1x128xf32>
    %143 = vector.broadcast %142 : vector<1x128xf32> to vector<128x128xf32>
    %144 = arith.addf %141, %143 : vector<128x128xf32>
    %cst_156 = arith.constant 0.000000e+00 : f32
    %145 = vector.broadcast %cst_156 : f32 to vector<128x128xf32>
    %146 = arith.maximumf %144, %145 : vector<128x128xf32>
    %147 = vector.shape_cast %146 : vector<128x128xf32> to vector<8x16x128xf32>
    %c0_157 = arith.constant 0 : index
    %c0_158 = arith.constant 0 : index
    %c0_159 = arith.constant 0 : index
    %c0_160 = arith.constant 0 : index
    %148 = vector.load %arg9[%c0_157, %c0_158, %c0_159, %c0_160] : memref<1x8x16x128xf32, #tpu.memory_space<vmem>>, vector<1x8x16x128xf32>
    %149 = vector.shape_cast %148 : vector<1x8x16x128xf32> to vector<8x16x128xf32>
    %150 = vector.shape_cast %147 : vector<8x16x128xf32> to vector<1x8x16x128xf32>
    tpu.vector_store %arg9[%c0_157, %c0_158, %c0_159, %c0_160], %150 {strides = array<i32>} : memref<1x8x16x128xf32, #tpu.memory_space<vmem>>, vector<1x8x16x128xf32>,
    return
  }
  func.func @transform_0(%arg0: i32, %arg1: i32) -> (i32, i32, i32, i32) {
    %c0_i32 = arith.constant 0 : i32
    %c0_i32_0 = arith.constant 0 : i32
    %c0_i32_1 = arith.constant 0 : i32
    return %arg0, %arg1, %c0_i32, %c0_i32_0 : i32, i32, i32, i32
  }
  func.func @transform_1(%arg0: i32, %arg1: i32) -> (i32, i32, i32, i32) {
    %c4_i32 = arith.constant 4 : i32
    %0 = arith.muli %arg1, %c4_i32 : i32
    %c1_i32 = arith.constant 1 : i32
    %1 = arith.subi %0, %c1_i32 : i32
    %c0_i32 = arith.constant 0 : i32
    %2 = arith.maxsi %1, %c0_i32 : i32
    %c0_i32_0 = arith.constant 0 : i32
    %c0_i32_1 = arith.constant 0 : i32
    %c0_i32_2 = arith.constant 0 : i32
    return %arg0, %2, %c0_i32_0, %c0_i32_1 : i32, i32, i32, i32
  }
  func.func @transform_2(%arg0: i32, %arg1: i32) -> (i32, i32, i32, i32) {
    %c1_i32 = arith.constant 1 : i32
    %0 = arith.addi %arg1, %c1_i32 : i32
    %c4_i32 = arith.constant 4 : i32
    %1 = arith.muli %0, %c4_i32 : i32
    %c7_i32 = arith.constant 7 : i32
    %2 = arith.minsi %1, %c7_i32 : i32
    %c0_i32 = arith.constant 0 : i32
    %c0_i32_0 = arith.constant 0 : i32
    %c0_i32_1 = arith.constant 0 : i32
    return %arg0, %2, %c0_i32, %c0_i32_0 : i32, i32, i32, i32
  }
  func.func @transform_3(%arg0: i32, %arg1: i32) -> (i32, i32, i32) {
    %c0_i32 = arith.constant 0 : i32
    %c0_i32_0 = arith.constant 0 : i32
    %c0_i32_1 = arith.constant 0 : i32
    %c0_i32_2 = arith.constant 0 : i32
    return %c0_i32, %c0_i32_0, %c0_i32_1 : i32, i32, i32
  }
  func.func @transform_4(%arg0: i32, %arg1: i32) -> (i32, i32) {
    %c0_i32 = arith.constant 0 : i32
    %c0_i32_0 = arith.constant 0 : i32
    %c0_i32_1 = arith.constant 0 : i32
    return %c0_i32, %c0_i32_0 : i32, i32
  }
  func.func @transform_5(%arg0: i32, %arg1: i32) -> (i32, i32, i32) {
    %c0_i32 = arith.constant 0 : i32
    %c0_i32_0 = arith.constant 0 : i32
    %c0_i32_1 = arith.constant 0 : i32
    %c0_i32_2 = arith.constant 0 : i32
    return %c0_i32, %c0_i32_0, %c0_i32_1 : i32, i32, i32
  }
  func.func @transform_6(%arg0: i32, %arg1: i32) -> (i32, i32) {
    %c0_i32 = arith.constant 0 : i32
    %c0_i32_0 = arith.constant 0 : i32
    %c0_i32_1 = arith.constant 0 : i32
    return %c0_i32, %c0_i32_0 : i32, i32
  }
  func.func @transform_7(%arg0: i32, %arg1: i32) -> (i32, i32, i32, i32) {
    %c0_i32 = arith.constant 0 : i32
    %c0_i32_0 = arith.constant 0 : i32
    %c0_i32_1 = arith.constant 0 : i32
    return %arg0, %arg1, %c0_i32, %c0_i32_0 : i32, i32, i32, i32
  }
}

</mosaic_0001>

<bundles_post_ra>
// kernel: tpu_custom_call.1
= control target key start
LH: loop header
LB: loop body
LE: loop exit
PB: predicated region body
PF: predicated region fallthrough
CT: control target
= control target key end

     0   :  { %s8978_s0 = inlined_call_operand.vmem [shape: f32[2,16,16,4], index: 0, kind: input, shape index: {}]   ;;  %s8979_s1 = inlined_call_operand.vmem [shape: f32[2,16,16,4], index: 1, kind: input, shape index: {}]   ;;  %s8980_s2 = inlined_call_operand.vmem [shape: f32[2,16,16,4], index: 2, kind: input, shape index: {}]   ;;  %s8981_s3 = inlined_call_operand.vmem [shape: f32[9,4,128], index: 3, kind: input, shape index: {}]   ;;  %s8982_s4 = inlined_call_operand.vmem [shape: f32[1,128], index: 4, kind: input, shape index: {}]   ;;  %s8983_s5 = inlined_call_operand.vmem [shape: f32[9,128,128], index: 5, kind: input, shape index: {}]   ;;  %s8984_s6 = inlined_call_operand.vmem [shape: f32[1,128], index: 6, kind: input, shape index: {}]   ;;  %s8985_s7 = inlined_call_operand.hbm [shape: f32[2,16,16,128], index: 7, kind: output, shape index: {}]  }
   0x1   :  { %8993 = sst [smem:[#allocation14_spill]] %s8978_s0 }
   0x2   :  { %12 = vsyncpa [#allocation5], 0 }
   0x3   :  { %14 = vsyncpa [#allocation5 + $0x1], 0  ;;  %s7400_s24 = smov 0   ;;  %s7402_s25 = smov 0  }
   0x4   :  { %s7404_s26 = smov 0   ;;  %s7406_s27 = smov 0  }
   0x5   :  { %s7408_s28 = smov 0   ;;  %s7410_s29 = smov 0  }
   0x6   :  { %s7412_s30 = smov 0   ;;  %s7414_s8 = smov 0  }
   0x7 LB: > { %8994 = sst [smem:[#allocation7_spill]] %s7330_s26  ;;  %s4957_s9 = sadd.s32 4294967295, %s7350_s8   ;;  %s7350_s8 = sphi %s7414_s8, %s20_s8   ;;  %s7346_s30 = sphi %s7412_s30, %s9012_s30   ;;  %s7342_s29 = sphi %s7410_s29, %s9011_s29   ;;  %s7338_s28 = sphi %s7408_s28, %s9010_s28   ;;  %s7334_s27 = sphi %s7406_s27, %s9009_s27   ;;  %s7330_s26 = sphi %s7404_s26, %s9008_s26   ;;  %s7326_s25 = sphi %s7402_s25, %s9014_s25   ;;  %s7322_s24 = sphi %s7400_s24, %s9013_s24  }
   0x8   : > { %8995 = sst [smem:[#allocation8_spill]] %s7342_s29  ;;  %s4958_s10 = sadd.s32 4294967294, %s7350_s8  }
   0x9   : > { %8996 = sst [smem:[#allocation9_spill]] %s7346_s30  ;;  %s29_s11 = sadd.s32 1, %s7342_s29 }
   0xa   : > { %p30_p0 = scmp.ge.s32.totalorder %s29_s11, 2  ;;  %s32_s12 = sadd.s32 1, %s7346_s30 }
   0xb   : > { %p235_p1 = scmp.ne.s32.totalorder %s7330_s26, %s7326_s25  ;;  %p236_p2 = scmp.eq.s32.totalorder %s4957_s9, 3 }
   0xc   : > { %s9016_s11 = smov (%p30_p0, %s29_s11), 0  ;;  %s9018_s12 = smov (!%p30_p0, %s32_s12), %s7346_s30 }
   0xd   : > { %8997 = sst [smem:[#allocation10_spill]] %s9016_s11  ;;  %s221_s13 = ssub.s32 %s7342_s29, %s9016_s11 }
   0xe   : > { %p7451_p3 = por %p236_p2, %p235_p1  ;;  %p34_p4 = scmp.ge.s32.totalorder %s9018_s12, 2 }
   0xf   : > { %p241_p5 = scmp.ne.s32.totalorder %s7326_s25, %s7322_s24  ;;  %p242_p6 = scmp.eq.s32.totalorder %s4958_s10, 3 }
  0x10   : > { %p4967_p7 = scmp.ge.s32.totalorder %s7350_s8, 1  ;;  %s9020_s12 = smov (%p34_p4, %s9018_s12), 0 }
  0x11   : > { %8999 = sst [smem:[#allocation11_spill]] %s9020_s12  ;;  %p7460_p8 = por %p242_p6, %p241_p5 }
  0x12   : > { %p330_p9 = scmp.lt.s32.totalorder %s7350_s8, 5  ;;  %s220_s16 = ssub.s32 %s7346_s30, %s9020_s12 }
  0x13   : > { %s9000_s15 = scalar_select %p7460_p8, 1, 0 }
  0x14   : > { %s225_s17 = sadd.s32 1, %s7330_s26  ;;  %s222_s18 = sor.u32 %s221_s13, %s220_s16 }
  0x15   : > { %9001 = sst [smem:[#allocation12_spill]] %s9000_s15  ;;  %p331_p10 = pnand %p4967_p7, %p330_p9 }
  0x16   : > { %p223_p11 = scmp.eq.s32.totalorder %s222_s18, 0  ;;  %s8986_s20 = sand.u32 (!%p331_p10), 1, %s7326_s25   ;;  %vm445_vm0 = vcmask (!%p331_p10), 24576   ;;  %v7352_v0 = vmov (!%p331_p10), 0.0   ;;  %vm487_vm1 = vcmask (!%p331_p10), 31744  }
  0x17   : > { %334 = sbr.rel (%p331_p10) target bundleno = 1181 (0x49d), region = 48  ;;  %s4969_s21 = sshll.u32 (!%p331_p10), %s7334_s27, 3  ;;  %446 = vst.msk [vmem:[#allocation2] sm:$0x1] (!%p331_p10), %vm445_vm0, %v7352_v0  ;;  %447 = vst.msk [vmem:[#allocation2 + $0x18] sm:$0x1] (!%p331_p10), %vm445_vm0, %v7352_v0 }
  0x18   : > { %s7469_s19 = scalar_select %p223_p11, %s7330_s26, %s225_s17  }
  0x19   : > { %s7475_s22 = sshll.u32 (!%p331_p10), %s8986_s20, 7  ;;  %448 = vst.msk [vmem:[#allocation2 + $0x30] sm:$0x1] (!%p331_p10), %vm445_vm0, %v7352_v0  ;;  %449 = vst.msk [vmem:[#allocation2 + $0x48] sm:$0x1] (!%p331_p10), %vm445_vm0, %v7352_v0  ;;  %p396_p12 = scmp.lt.s32.totalorder (!%p331_p10), %s7338_s28, 1 }
  0x1a   : > { %9002 = sst [smem:[#allocation13_spill]] %s7469_s19  ;;  %450 = vst.msk [vmem:[#allocation2 + $0x60] sm:$0x1] (!%p331_p10), %vm445_vm0, %v7352_v0  ;;  %451 = vst.msk [vmem:[#allocation2 + $0x78] sm:$0x1] (!%p331_p10), %vm445_vm0, %v7352_v0  ;;  %p398_p13 = scmp.lt.s32.totalorder (!%p331_p10), %s4969_s21, 15 }
  0x1b   : > { %452 = vst.msk [vmem:[#allocation2 + $0x90] sm:$0x1] (!%p331_p10), %vm445_vm0, %v7352_v0  ;;  %453 = vst.msk [vmem:[#allocation2 + $0xa8] sm:$0x1] (!%p331_p10), %vm445_vm0, %v7352_v0  ;;  %s4973_s10 = sshll.u32 (!%p331_p10), %s7334_s27, 2  ;;  %s9003_s0 = sld [smem:[#allocation14_spill]] (!%p331_p10) }
  0x1c   : > { %454 = vst.msk [vmem:[#allocation2 + $0xc0] sm:$0x1] (!%p331_p10), %vm445_vm0, %v7352_v0  ;;  %455 = vst.msk [vmem:[#allocation2 + $0xd8] sm:$0x1] (!%p331_p10), %vm445_vm0, %v7352_v0  ;;  %s4974_s16 = sadd.s32 (!%p331_p10), 4294967295, %s4973_s10  ;;  %s5329_s20 = sadd.s32 (!%p331_p10), 4, %s4973_s10 }
  0x1d   : > { %456 = vst.msk [vmem:[#allocation2 + $0xf0] sm:$0x1] (!%p331_p10), %vm445_vm0, %v7352_v0  ;;  %457 = vst.msk [vmem:[#allocation2 + $0x108] sm:$0x1] (!%p331_p10), %vm445_vm0, %v7352_v0  ;;  %p408_p0 = scmp.gt.s32.totalorder (!%p331_p10), %s4974_s16, 0  ;;  %p427_p1 = scmp.lt.s32.totalorder (!%p331_p10), %s5329_s20, 7 }
  0x1e   : > { %458 = vst.msk [vmem:[#allocation2 + $0x11] sm:$0x1] %vm445_vm0, %v7352_v0  ;;  %459 = vst.msk [vmem:[#allocation2 + $0x29] sm:$0x1] %vm445_vm0, %v7352_v0  ;;  %s397_s23 = scalar_select %p396_p12, %s7338_s28, 1 }
  0x1f   : > { %460 = vst.msk [vmem:[#allocation2 + $0x41] sm:$0x1] %vm445_vm0, %v7352_v0  ;;  %461 = vst.msk [vmem:[#allocation2 + $0x59] sm:$0x1] %vm445_vm0, %v7352_v0  ;;  %s9022_s21 = smov (!%p398_p13, %s4969_s21), 15  ;;  %s9024_s16 = smov (!%p408_p0, %s4974_s16), 0 }
  0x20   : > { %462 = vst.msk [vmem:[#allocation2 + $0x71] sm:$0x1] %vm445_vm0, %v7352_v0  ;;  %463 = vst.msk [vmem:[#allocation2 + $0x89] sm:$0x1] %vm445_vm0, %v7352_v0  ;;  %s7531_s9 = sshll.u32 %s397_s23, 5  ;;  %s4970_s13 = sshll.u32 %s9022_s21, 1 }
  0x21   : > { %464 = vst.msk [vmem:[#allocation2 + $0xa1] sm:$0x1] %vm445_vm0, %v7352_v0  ;;  %465 = vst.msk [vmem:[#allocation2 + $0xb9] sm:$0x1] %vm445_vm0, %v7352_v0  ;;  %s402_s17 = sadd.s32 %s7531_s9, %s4970_s13  ;;  %s9026_s20 = smov (!%p427_p1, %s5329_s20), 7 }
  0x22   : > { %466 = vst.msk [vmem:[#allocation2 + $0xd1] sm:$0x1] %vm445_vm0, %v7352_v0  ;;  %467 = vst.msk [vmem:[#allocation2 + $0xe9] sm:$0x1] %vm445_vm0, %v7352_v0  ;;  %s4972_s18 = sshll.u32 %s402_s17, 3  ;;  %s4975_s11 = sshll.u32 %s9024_s16, 1 }
  0x23   : > { %468 = vst.msk [vmem:[#allocation2 + $0x101] sm:$0x1] %vm445_vm0, %v7352_v0  ;;  %469 = vst.msk [vmem:[#allocation2 + $0x119] sm:$0x1] %vm445_vm0, %v7352_v0  ;;  %s7538_s30 = scalar_lea.vmem %s9003_s0, %s4972_s18  ;;  %p7560_p2 = scmp.lt.s32.totalorder %s4975_s11, 15 }
  0x24   : > { %v470_v1 = vld [vmem:[%s7538_s30] sm:$0xff]  ;;  %v471_v2 = vld [vmem:[%s7538_s30 + $0x8] sm:$0xff]  ;;  %v472_v3 = vld [vmem:[%s7538_s30 + $0x10] sm:$0xff]  ;;  %s4980_s21 = sshll.u32 %s9026_s20, 1  ;;  %s7595_s15 = scalar_lea.vmem [#allocation4], %s7475_s22 }
  0x25   : > { %488 = vst.msk [vmem:[#allocation2 + $0x31] sm:$0xff] %vm487_vm1, %v470_v1  ;;  %489 = vst.msk [vmem:[#allocation2 + $0x39] sm:$0xff] %vm487_vm1, %v471_v2  ;;  %v473_v4 = vld [vmem:[%s7538_s30 + $0x18] sm:$0xff]  ;;  %v474_v5 = vld [vmem:[%s7538_s30 + $0x20] sm:$0xff]  ;;  %p432_p4 = scmp.lt.s32.totalorder %s4980_s21, 15  ;;  %s9028_s11 = smov (!%p7560_p2, %s4975_s11), 15 }
  0x26   : > { %490 = vst.msk [vmem:[#allocation2 + $0x49] sm:$0xff] %vm487_vm1, %v472_v3  ;;  %v475_v6 = vld [vmem:[%s7538_s30 + $0x28] sm:$0xff]  ;;  %491 = vst.msk [vmem:[#allocation2 + $0x51] sm:$0xff] %vm487_vm1, %v473_v4  ;;  %v476_v7 = vld [vmem:[%s7538_s30 + $0x30] sm:$0xff]  ;;  %s4976_s20 = sshll.u32 %s9028_s11, 1  ;;  %p4984_p5 = scmp.le.s32.totalorder %s7334_s27, 0 }
  0x27   : > { %492 = vst.msk [vmem:[#allocation2 + $0x61] sm:$0xff] %vm487_vm1, %v474_v5  ;;  %493 = vst.msk [vmem:[#allocation2 + $0x69] sm:$0xff] %vm487_vm1, %v475_v6  ;;  %v477_v8 = vld [vmem:[%s7538_s30 + $0x38] sm:$0xff]  ;;  %v478_v9 = vld [vmem:[%s7538_s30 + $0x40] sm:$0xff]  ;;  %s9030_s21 = smov (!%p432_p4, %s4980_s21), 15  ;;  %s417_s23 = sadd.s32 %s4976_s20, %s7531_s9 }
  0x28   : > { %494 = vst.msk [vmem:[#allocation2 + $0x79] sm:$0xff] %vm487_vm1, %v476_v7  ;;  %495 = vst.msk [vmem:[#allocation2 + $0x81] sm:$0xff] %vm487_vm1, %v477_v8  ;;  %v479_v10 = vld [vmem:[%s7538_s30 + $0x48] sm:$0xff]  ;;  %v480_v11 = vld [vmem:[%s7538_s30 + $0x50] sm:$0xff]  ;;  %s4981_s10 = sshll.u32 %s9030_s21, 1  ;;  %s4978_s13 = sshll.u32 %s417_s23, 3 }
  0x29   : > { %496 = vst.msk [vmem:[#allocation2 + $0x91] sm:$0xff] %vm487_vm1, %v478_v9  ;;  %v481_v12 = vld [vmem:[%s7538_s30 + $0x58] sm:$0xff]  ;;  %497 = vst.msk [vmem:[#allocation2 + $0x99] sm:$0xff] %vm487_vm1, %v479_v10  ;;  %v482_v13 = vld [vmem:[%s7538_s30 + $0x60] sm:$0xff]  ;;  %s436_s16 = sadd.s32 %s4981_s10, %s7531_s9  ;;  %s419_s12 = scalar_lea.vmem %s8979_s1, %s4978_s13 }
  0x2a   : > { %498 = vst.msk [vmem:[#allocation2 + $0xa9] sm:$0xff] %vm487_vm1, %v480_v11  ;;  %499 = vst.msk [vmem:[#allocation2 + $0xb1] sm:$0xff] %vm487_vm1, %v481_v12  ;;  %v483_v14 = vld [vmem:[%s7538_s30 + $0x68] sm:$0xff]  ;;  %v484_v15 = vld [vmem:[%s7538_s30 + $0x70] sm:$0xff]  ;;  %s4983_s0 = sshll.u32 %s436_s16, 3  ;;  %507 = sbr.rel (%p4984_p5) target bundleno = 49 (0x31), region = 52 }
  0x2b   : > { %500 = vst.msk [vmem:[#allocation2 + $0xc1] sm:$0xff] %vm487_vm1, %v482_v13  ;;  %501 = vst.msk [vmem:[#allocation2 + $0xc9] sm:$0xff] %vm487_vm1, %v483_v14  ;;  %v485_v16 = vld [vmem:[%s7538_s30 + $0x78] sm:$0xff]  ;;  %s7592_s26 = scalar_lea.vmem %s8980_s2, %s4983_s0  ;;  %v508_v17 = vld [vmem:[%s419_s12] sm:$0xff] (!%p4984_p5) }
  0x2c   : > { %502 = vst.msk [vmem:[#allocation2 + $0xd9] sm:$0xff] %vm487_vm1, %v484_v15  ;;  %503 = vst.msk [vmem:[#allocation2 + $0xe1] sm:$0xff] %vm487_vm1, %v485_v16  ;;  %v509_v18 = vld [vmem:[%s419_s12 + $0x8] sm:$0xff] (!%p4984_p5)  ;;  %v510_v19 = vld [vmem:[%s419_s12 + $0x10] sm:$0xff] (!%p4984_p5) }
  0x2d   : > { %512 = vst.msk [vmem:[#allocation2 + $0x1] sm:$0xff] (!%p4984_p5), %vm487_vm1, %v508_v17  ;;  %513 = vst.msk [vmem:[#allocation2 + $0x9] sm:$0xff] (!%p4984_p5), %vm487_vm1, %v509_v18  ;;  %v511_v20 = vld [vmem:[%s419_s12 + $0x18] sm:$0xff] (!%p4984_p5) }
  0x2e   : > { %514 = vst.msk [vmem:[#allocation2 + $0x19] sm:$0xff] (!%p4984_p5), %vm487_vm1, %v510_v19  ;;  %515 = vst.msk [vmem:[#allocation2 + $0x21] sm:$0xff] (!%p4984_p5), %vm487_vm1, %v511_v20 }
  0x31 PF: > { %p4985_p6 = scmp.ne.s32.totalorder %s7334_s27, 0 }
  0x32   : > { %vm522_vm2 = vcmask (!%p4985_p6), 25600   ;;  %v7353_v21 = vmov (!%p4985_p6), 0.0  }
  0x33   : > { %519 = sbr.rel (%p4985_p6) target bundleno = 58 (0x3a), region = 56  ;;  %520 = vst.msk [vmem:[#allocation2] sm:$0xff] (!%p4985_p6), %vm487_vm1, %v7353_v21  ;;  %521 = vst.msk [vmem:[#allocation2 + $0x8] sm:$0xff] (!%p4985_p6), %vm487_vm1, %v7353_v21 }
  0x34   : > { %524 = vst.msk [vmem:[#allocation2 + $0x18] sm:$0xff] (!%p4985_p6), %vm487_vm1, %v7353_v21  ;;  %525 = vst.msk [vmem:[#allocation2 + $0x20] sm:$0xff] (!%p4985_p6), %vm487_vm1, %v7353_v21 }
  0x35   : > { %523 = vst.msk [vmem:[#allocation2 + $0x10] sm:$0x3] (!%p4985_p6), %vm522_vm2, %v7353_v21  ;;  %526 = vst.msk [vmem:[#allocation2 + $0x28] sm:$0x3] (!%p4985_p6), %vm522_vm2, %v7353_v21 }
  0x3a PF: > { %p4986_p7 = scmp.ge.s32.totalorder %s7334_s27, 1 }
  0x3b   : > { %v531_v22 = vld [vmem:[%s7592_s26] sm:$0xff] (!%p4986_p7)  ;;  %v532_v23 = vld [vmem:[%s7592_s26 + $0x8] sm:$0xff] (!%p4986_p7)  ;;  %v533_v24 = vld [vmem:[%s7592_s26 + $0x10] sm:$0xff] (!%p4986_p7) }
  0x3c   : > { %530 = sbr.rel (%p4986_p7) target bundleno = 67 (0x43), region = 60  ;;  %536 = vst.msk [vmem:[#allocation2 + $0xf1] sm:$0xff] (!%p4986_p7), %vm487_vm1, %v531_v22  ;;  %537 = vst.msk [vmem:[#allocation2 + $0xf9] sm:$0xff] (!%p4986_p7), %vm487_vm1, %v532_v23  ;;  %v534_v25 = vld [vmem:[%s7592_s26 + $0x18] sm:$0xff] (!%p4986_p7) }
  0x3d   : > { %538 = vst.msk [vmem:[#allocation2 + $0x109] sm:$0xff] (!%p4986_p7), %vm487_vm1, %v533_v24  ;;  %539 = vst.msk [vmem:[#allocation2 + $0x111] sm:$0xff] (!%p4986_p7), %vm487_vm1, %v534_v25 }
  0x43 PF: > { %p4987_p9 = scmp.ne.s32.totalorder %s7334_s27, 1 }
  0x44   : > { %vm547_vm3 = vcmask (!%p4987_p9), 25600   ;;  %v7354_v26 = vmov (!%p4987_p9), 0.0  }
  0x45   : > { %543 = sbr.rel (%p4987_p9) target bundleno = 76 (0x4c), region = 64  ;;  %545 = vst.msk [vmem:[#allocation2 + $0xf0] sm:$0xff] (!%p4987_p9), %vm487_vm1, %v7354_v26  ;;  %546 = vst.msk [vmem:[#allocation2 + $0xf8] sm:$0xff] (!%p4987_p9), %vm487_vm1, %v7354_v26 }
  0x46   : > { %549 = vst.msk [vmem:[#allocation2 + $0x108] sm:$0xff] (!%p4987_p9), %vm487_vm1, %v7354_v26  ;;  %550 = vst.msk [vmem:[#allocation2 + $0x110] sm:$0xff] (!%p4987_p9), %vm487_vm1, %v7354_v26 }
  0x47   : > { %548 = vst.msk [vmem:[#allocation2 + $0x100] sm:$0x3] (!%p4987_p9), %vm547_vm3, %v7354_v26  ;;  %551 = vst.msk [vmem:[#allocation2 + $0x118] sm:$0x3] (!%p4987_p9), %vm547_vm3, %v7354_v26 }
  0x4c PF: > { %v4988_v27 = vld [vmem:[%s8981_s3 + $0x4] sm:$0xf]  ;;  %vm655_vm4 = vcmask 1043456   ;;  %v574_v29 = vld [vmem:[#allocation2 + $0x9] sm:$0xff]  ;;  %2990 = vst [vmem:[#allocation3] sm:$0x1] %v7352_v0 }
  0x4d   : > { %v573_v28 = vld [vmem:[#allocation2 + $0x1] sm:$0xff]  ;;  %2991 = vst [vmem:[#allocation3 + $0x18] sm:$0x1] %v7352_v0  ;;  %2992 = vst [vmem:[#allocation3 + $0x30] sm:$0x1] %v7352_v0  ;;  %5808 = vmatprep.subr.msk.mxu0 %vm655_vm4, %v4988_v27  ;;  %6888 = vmatprep.subr.msk.mxu1 %vm655_vm4, %v4988_v27  ;;  %v7664_v34 = vld [vmem:[#allocation2 + $0x18] sm:$0xff] }
  0x4e   : > { %2993 = vst [vmem:[#allocation3 + $0x48] sm:$0x1] %v7352_v0  ;;  %2994 = vst [vmem:[#allocation3 + $0x60] sm:$0x1] %v7352_v0  ;;  %5810 = vmatprep.mubr.msk.f32.mxu0 %vm487_vm1, %v573_v28  ;;  %v572_v30 = vld [vmem:[%s8981_s3] sm:$0xf]  ;;  %5809 = vmatpush3.msk.msra.mxu0 %vm655_vm4, %v4988_v27 }
  0x4f   : > { %2995 = vst [vmem:[#allocation3 + $0x78] sm:$0x1] %v7352_v0  ;;  %2996 = vst [vmem:[#allocation3 + $0x90] sm:$0x1] %v7352_v0  ;;  %v552_v31 = vld [vmem:[#allocation2] sm:$0xff]  ;;  %5811 = vmatmul.mubr.msk.f32.vlgmr.msra.gmra.mrb[0].mxu0 %vm487_vm1, %v574_v29  ;;  %5840 = vmatprep.subr.msk.mxu0 %vm655_vm4, %v572_v30  ;;  %v553_v33 = vld [vmem:[#allocation2 + $0x8] sm:$0xff] }
  0x50   : > { %2997 = vst [vmem:[#allocation3 + $0xa8] sm:$0x1] %v7352_v0  ;;  %2998 = vst [vmem:[#allocation3 + $0xc0] sm:$0x1] %v7352_v0  ;;  %v5031_v32 = vld [vmem:[%s8981_s3 + $0x8] sm:$0xf]  ;;  %5841 = vmatpush3.msk.msra.mxu0 %vm655_vm4, %v572_v30  ;;  %5842 = vmatprep.mubr.msk.f32.mxu0 %vm487_vm1, %v552_v31 }
  0x51   : > { %2999 = vst [vmem:[#allocation3 + $0xd8] sm:$0x1] %v7352_v0  ;;  %3000 = vst [vmem:[#allocation3 + $0x11] sm:$0x1] %v7352_v0  ;;  %5872 = vmatprep.subr.msk.mxu0 %vm655_vm4, %v5031_v32  ;;  %6889 = vmatpush3.msk.msra.mxu1 %vm655_vm4, %v4988_v27  ;;  %v7669_v35 = vld [vmem:[%s8981_s3 + $0xc] sm:$0xf] }
  0x52   : > { %3001 = vst [vmem:[#allocation3 + $0x29] sm:$0x1] %v7352_v0  ;;  %3002 = vst [vmem:[#allocation3 + $0x41] sm:$0x1] %v7352_v0  ;;  %v7675_v36 = vld [vmem:[#allocation2 + $0x20] sm:$0xff]  ;;  %v7677_v37 = vld [vmem:[#allocation2 + $0x30] sm:$0xff] }
  0x53   : > { %3003 = vst [vmem:[#allocation3 + $0x59] sm:$0x1] %v7352_v0  ;;  %3004 = vst [vmem:[#allocation3 + $0x71] sm:$0x1] %v7352_v0  ;;  %v7685_v38 = vld [vmem:[#allocation2 + $0x38] sm:$0xff]  ;;  %v7689_v40 = vld [vmem:[#allocation2 + $0x48] sm:$0xff] }
  0x54   : > { %3005 = vst [vmem:[#allocation3 + $0x89] sm:$0x1] %v7352_v0  ;;  %3006 = vst [vmem:[#allocation3 + $0xa1] sm:$0x1] %v7352_v0  ;;  %v7687_v39 = vld [vmem:[#allocation2 + $0x19] sm:$0xff]  ;;  %v7691_v41 = vld [vmem:[#allocation2 + $0x21] sm:$0xff] }
  0x55   : > { %3007 = vst [vmem:[#allocation3 + $0xb9] sm:$0x1] %v7352_v0  ;;  %3008 = vst [vmem:[#allocation3 + $0xd1] sm:$0x1] %v7352_v0  ;;  %5813 = vmatprep.mubr.msk.f32.mxu1 %vm487_vm1, %v7687_v39  ;;  %v7695_v42 = vld [vmem:[#allocation2 + $0x31] sm:$0xff]  ;;  %v7707_v44 = vld [vmem:[#allocation2 + $0x60] sm:$0xff] }
  0x56   : > { %3009 = vst [vmem:[#allocation3 + $0xe9] sm:$0x1] %v7352_v0  ;;  %5814 = vmatmul.mubr.msk.f32.vlgmr.msra.gmra.mrb[0].mxu1 %vm487_vm1, %v7691_v41  ;;  %v7705_v43 = vld [vmem:[#allocation2 + $0x50] sm:$0xff]  ;;  %v7709_v45 = vld [vmem:[#allocation2 + $0x39] sm:$0xff]  ;;  %v7721_v47 = vld [vmem:[#allocation2 + $0x68] sm:$0xff] }
  0x57   : > { %5843 = vmatmul.mubr.msk.f32.vlgmr.msra.gmra.mrb[0].mxu0 %vm487_vm1, %v553_v33  ;;  %5816 = vmatprep.mubr.msk.f32.mxu1 %vm487_vm1, %v7695_v42  ;;  %v7711_v46 = vld [vmem:[#allocation2 + $0x49] sm:$0xff]  ;;  %v7723_v48 = vld [vmem:[#allocation2 + $0x78] sm:$0xff]  ;;  %v7727_v50 = vld [vmem:[#allocation2 + $0x61] sm:$0xff] }
  0x58   : > { %5873 = vmatpush3.msk.msra.mxu0 %vm655_vm4, %v5031_v32  ;;  %5845 = vmatprep.mubr.msk.f32.mxu0 %vm487_vm1, %v7664_v34  ;;  %v7725_v49 = vld [vmem:[#allocation2 + $0x51] sm:$0xff]  ;;  %v7737_v51 = vld [vmem:[#allocation2 + $0x80] sm:$0xff]  ;;  %v7741_v53 = vld [vmem:[#allocation2 + $0x69] sm:$0xff] }
  0x59   : > { %5904 = vmatprep.subr.msk.mxu0 %vm655_vm4, %v7669_v35  ;;  %v7739_v52 = vld [vmem:[#allocation2 + $0x90] sm:$0xff]  ;;  %v7743_v54 = vld [vmem:[#allocation2 + $0x79] sm:$0xff]  ;;  %v7755_v56 = vld [vmem:[#allocation2 + $0xa8] sm:$0xff] }
  0x5a   : > { %5817 = vmatmul.mubr.msk.f32.gmra.mrb[2].mxu1 %vm487_vm1, %v7709_v45  ;;  %v7753_v55 = vld [vmem:[#allocation2 + $0x98] sm:$0xff]  ;;  %v7757_v57 = vld [vmem:[#allocation2 + $0x81] sm:$0xff]  ;;  %v7769_v59 = vld [vmem:[#allocation2 + $0xb0] sm:$0xff] }
  0x5b   : > { %5846 = vmatmul.mubr.msk.f32.gmra.mrb[2].mxu0 %vm487_vm1, %v7675_v36  ;;  %5819 = vmatprep.mubr.msk.f32.mxu1 %vm487_vm1, %v7711_v46  ;;  %v7759_v58 = vld [vmem:[#allocation2 + $0x91] sm:$0xff]  ;;  %v7771_v60 = vld [vmem:[#allocation2 + $0xc0] sm:$0xff]  ;;  %v7775_v62 = vld [vmem:[#allocation2 + $0xa9] sm:$0xff] }
  0x5c   : > { %5848 = vmatprep.mubr.msk.f32.mxu0 %vm487_vm1, %v7677_v37  ;;  %v7773_v61 = vld [vmem:[#allocation2 + $0x99] sm:$0xff]  ;;  %v7785_v63 = vld [vmem:[#allocation2 + $0xc8] sm:$0xff]  ;;  %v7789_v1 = vld [vmem:[#allocation2 + $0xb1] sm:$0xff] }
  0x5d   : > { %v7787_v0 = vld [vmem:[#allocation2 + $0xd8] sm:$0xff]  ;;  %v7791_v2 = vld [vmem:[#allocation2 + $0xc1] sm:$0xff]  ;;  %v7803_v5 = vld [vmem:[#allocation2 + $0xc9] sm:$0xff] }
  0x5e   : > { %5820 = vmatmul.mubr.msk.f32.gmra.mrb[4].mxu1 %vm487_vm1, %v7725_v49  ;;  %v7801_v3 = vld [vmem:[#allocation2 + $0xe0] sm:$0xff]  ;;  %v1053_v7 = vld [vmem:[#allocation2 + $0xa] sm:$0xff]  ;;  %v7830_v12 = vld [vmem:[#allocation2 + $0x32] sm:$0xff] }
  0x5f   : > { %5849 = vmatmul.mubr.msk.f32.gmra.mrb[4].mxu0 %vm487_vm1, %v7685_v38  ;;  %5822 = vmatprep.mubr.msk.f32.mxu1 %vm487_vm1, %v7727_v50  ;;  %v1052_v4 = vld [vmem:[#allocation2 + $0x2] sm:$0xff]  ;;  %v7805_v6 = vld [vmem:[#allocation2 + $0xd9] sm:$0xff]  ;;  %v5075_v10 = vld [vmem:[%s8981_s3 + $0x10] sm:$0xf] }
  0x60   : > { %5851 = vmatprep.mubr.msk.f32.mxu0 %vm487_vm1, %v7689_v40  ;;  %v7814_v8 = vld [vmem:[#allocation2 + $0x1a] sm:$0xff]  ;;  %v7828_v11 = vld [vmem:[#allocation2 + $0x22] sm:$0xff]  ;;  %v7839_v14 = vld [vmem:[#allocation2 + $0x4a] sm:$0xff] }
  0x61   : > { %v7816_v9 = vld [vmem:[#allocation2 + $0xe1] sm:$0xff]  ;;  %v7845_v15 = vld [vmem:[#allocation2 + $0x52] sm:$0xff]  ;;  %v7853_v17 = vld [vmem:[#allocation2 + $0x6a] sm:$0xff] }
  0x62   : > { %5823 = vmatmul.mubr.msk.f32.gmra.mrb[6].mxu1 %vm487_vm1, %v7741_v53  ;;  %v7837_v13 = vld [vmem:[#allocation2 + $0x3a] sm:$0xff]  ;;  %v7847_v16 = vld [vmem:[#allocation2 + $0x62] sm:$0xff]  ;;  %v7863_v20 = vld [vmem:[#allocation2 + $0x92] sm:$0xff] }
  0x63   : > { %5852 = vmatmul.mubr.msk.f32.gmra.mrb[6].mxu0 %vm487_vm1, %v7705_v43  ;;  %5825 = vmatprep.mubr.msk.f32.mxu1 %vm487_vm1, %v7743_v54  ;;  %v7855_v18 = vld [vmem:[#allocation2 + $0x7a] sm:$0xff]  ;;  %v7861_v19 = vld [vmem:[#allocation2 + $0x82] sm:$0xff]  ;;  %v7871_v22 = vld [vmem:[#allocation2 + $0xaa] sm:$0xff] }
  0x64   : > { %5854 = vmatprep.mubr.msk.f32.mxu0 %vm487_vm1, %v7707_v44  ;;  %v7869_v21 = vld [vmem:[#allocation2 + $0x9a] sm:$0xff]  ;;  %v7877_v23 = vld [vmem:[#allocation2 + $0xb2] sm:$0xff]  ;;  %v7879_v24 = vld [vmem:[#allocation2 + $0xc2] sm:$0xff] }
  0x65   : > { %v7885_v25 = vld [vmem:[#allocation2 + $0xca] sm:$0xff]  ;;  %v7887_v26 = vld [vmem:[#allocation2 + $0xda] sm:$0xff]  ;;  %v7893_v27 = vld [vmem:[#allocation2 + $0xe2] sm:$0xff] }
  0x66   : > { %5826 = vmatmul.mubr.msk.f32.gmra.mrb[8].mxu1 %vm487_vm1, %v7757_v57  ;;  %v5097_v28 = vld [vmem:[%s8981_s3 + $0x14] sm:$0xf]  ;;  %v7942_v30 = vld [vmem:[#allocation2 + $0xf8] sm:$0xff] }
  0x67   : > { %5855 = vmatmul.mubr.msk.f32.gmra.mrb[8].mxu0 %vm487_vm1, %v7721_v47  ;;  %5828 = vmatprep.mubr.msk.f32.mxu1 %vm487_vm1, %v7759_v58  ;;  %v7936_v29 = vld [vmem:[#allocation2 + $0xf0] sm:$0xff]  ;;  %v5119_v31 = vld [vmem:[%s8981_s3 + $0x18] sm:$0xf] }
  0x68   : > { %5857 = vmatprep.mubr.msk.f32.mxu0 %vm487_vm1, %v7723_v48  ;;  %v7985_v32 = vld [vmem:[#allocation2 + $0xf1] sm:$0xff]  ;;  %v7991_v33 = vld [vmem:[#allocation2 + $0xf9] sm:$0xff] }
  0x6a   : > { %5829 = vmatmul.mubr.msk.f32.gmra.mrb[10].mxu1 %vm487_vm1, %v7773_v61 }
  0x6b   : > { %5858 = vmatmul.mubr.msk.f32.gmra.mrb[10].mxu0 %vm487_vm1, %v7737_v51  ;;  %5831 = vmatprep.mubr.msk.f32.mxu1 %vm487_vm1, %v7775_v62 }
  0x6c   : > { %5860 = vmatprep.mubr.msk.f32.mxu0 %vm487_vm1, %v7739_v52 }
  0x6e   : > { %5832 = vmatmul.mubr.msk.f32.gmra.mrb[12].mxu1 %vm487_vm1, %v7789_v1 }
  0x6f   : > { %5861 = vmatmul.mubr.msk.f32.gmra.mrb[12].mxu0 %vm487_vm1, %v7753_v55  ;;  %5834 = vmatprep.mubr.msk.f32.mxu1 %vm487_vm1, %v7791_v2 }
  0x70   : > { %5863 = vmatprep.mubr.msk.f32.mxu0 %vm487_vm1, %v7755_v56 }
  0x72   : > { %5835 = vmatmul.mubr.msk.f32.gmra.mrb[14].mxu1 %vm487_vm1, %v7803_v5 }
  0x73   : > { %5864 = vmatmul.mubr.msk.f32.gmra.mrb[14].mxu0 %vm487_vm1, %v7769_v59  ;;  %5837 = vmatprep.mubr.msk.f32.mxu1 %vm487_vm1, %v7805_v6 }
  0x74   : > { %5866 = vmatprep.mubr.msk.f32.mxu0 %vm487_vm1, %v7771_v60 }
  0x76   : > { %5838 = vmatmul.mubr.msk.f32.gmra.mrb[16].mxu1 %vm487_vm1, %v7816_v9 }
  0x77   : > { %5867 = vmatmul.mubr.msk.f32.gmra.mrb[16].mxu0 %vm487_vm1, %v7785_v63 }
  0x78   : > { %5869 = vmatprep.mubr.msk.f32.mxu0 %vm487_vm1, %v7787_v0 }
  0x7b   : > { %5870 = vmatmul.mubr.msk.f32.gmra.mrb[18].mxu0 %vm487_vm1, %v7801_v3 }
  0x7c   : > { %5874 = vmatprep.mubr.msk.f32.mxu0 %vm487_vm1, %v1052_v4 }
  0x7f   : > { %5875 = vmatmul.mubr.msk.f32.vlgmr.msra.gmra.mrb[0].mxu0 %vm487_vm1, %v1053_v7 }
  0x80   : > { %5905 = vmatpush3.msk.msra.mxu0 %vm655_vm4, %v7669_v35  ;;  %5877 = vmatprep.mubr.msk.f32.mxu0 %vm487_vm1, %v7814_v8  ;;  %v8034_v35 = vld [vmem:[#allocation2 + $0xf2] sm:$0xff] }
  0x81   : > { %5936 = vmatprep.subr.msk.mxu0 %vm655_vm4, %v5075_v10 }
  0x83   : > { %5878 = vmatmul.mubr.msk.f32.gmra.mrb[2].mxu0 %vm487_vm1, %v7828_v11 }
  0x84   : > { %5880 = vmatprep.mubr.msk.f32.mxu0 %vm487_vm1, %v7830_v12 }
  0x87   : > { %5881 = vmatmul.mubr.msk.f32.gmra.mrb[4].mxu0 %vm487_vm1, %v7837_v13 }
  0x88   : > { %5883 = vmatprep.mubr.msk.f32.mxu0 %vm487_vm1, %v7839_v14 }
  0x8b   : > { %5884 = vmatmul.mubr.msk.f32.gmra.mrb[6].mxu0 %vm487_vm1, %v7845_v15 }
  0x8c   : > { %5886 = vmatprep.mubr.msk.f32.mxu0 %vm487_vm1, %v7847_v16 }
  0x8f   : > { %5887 = vmatmul.mubr.msk.f32.gmra.mrb[8].mxu0 %vm487_vm1, %v7853_v17 }
  0x90   : > { %5889 = vmatprep.mubr.msk.f32.mxu0 %vm487_vm1, %v7855_v18 }
  0x93   : > { %5890 = vmatmul.mubr.msk.f32.gmra.mrb[10].mxu0 %vm487_vm1, %v7861_v19 }
  0x94   : > { %5892 = vmatprep.mubr.msk.f32.mxu0 %vm487_vm1, %v7863_v20 }
  0x97   : > { %5893 = vmatmul.mubr.msk.f32.gmra.mrb[12].mxu0 %vm487_vm1, %v7869_v21 }
  0x98   : > { %5895 = vmatprep.mubr.msk.f32.mxu0 %vm487_vm1, %v7871_v22 }
  0x9b   : > { %5896 = vmatmul.mubr.msk.f32.gmra.mrb[14].mxu0 %vm487_vm1, %v7877_v23 }
  0x9c   : > { %5898 = vmatprep.mubr.msk.f32.mxu0 %vm487_vm1, %v7879_v24 }
  0x9f   : > { %5899 = vmatmul.mubr.msk.f32.gmra.mrb[16].mxu0 %vm487_vm1, %v7885_v25 }
  0xa0   : > { %5901 = vmatprep.mubr.msk.f32.mxu0 %vm487_vm1, %v7887_v26 }
  0xa3   : > { %5902 = vmatmul.mubr.msk.f32.gmra.mrb[18].mxu0 %vm487_vm1, %v7893_v27 }
  0xa4   : > { %5906 = vmatprep.mubr.msk.f32.mxu0 %vm487_vm1, %v7664_v34  ;;  %v5141_v34 = vld [vmem:[%s8981_s3 + $0x1c] sm:$0xf] }
  0xa7   : > { %5907 = vmatmul.mubr.msk.f32.vlgmr.msra.gmra.mrb[0].mxu0 %vm487_vm1, %v7675_v36  ;;  %v8040_v36 = vld [vmem:[#allocation2 + $0xfa] sm:$0xff] }
  0xa8   : > { %5937 = vmatpush3.msk.msra.mxu0 %vm655_vm4, %v5075_v10  ;;  %5909 = vmatprep.mubr.msk.f32.mxu0 %vm487_vm1, %v7677_v37 }
  0xa9   : > { %5968 = vmatprep.subr.msk.mxu0 %vm655_vm4, %v5097_v28 }
  0xab   : > { %5910 = vmatmul.mubr.msk.f32.gmra.mrb[2].mxu0 %vm487_vm1, %v7685_v38 }
  0xac   : > { %5912 = vmatprep.mubr.msk.f32.mxu0 %vm487_vm1, %v7689_v40 }
  0xaf   : > { %5913 = vmatmul.mubr.msk.f32.gmra.mrb[4].mxu0 %vm487_vm1, %v7705_v43 }
  0xb0   : > { %5915 = vmatprep.mubr.msk.f32.mxu0 %vm487_vm1, %v7707_v44 }
  0xb3   : > { %5916 = vmatmul.mubr.msk.f32.gmra.mrb[6].mxu0 %vm487_vm1, %v7721_v47 }
  0xb4   : > { %5918 = vmatprep.mubr.msk.f32.mxu0 %vm487_vm1, %v7723_v48 }
  0xb7   : > { %5919 = vmatmul.mubr.msk.f32.gmra.mrb[8].mxu0 %vm487_vm1, %v7737_v51 }
  0xb8   : > { %5921 = vmatprep.mubr.msk.f32.mxu0 %vm487_vm1, %v7739_v52 }
  0xbb   : > { %5922 = vmatmul.mubr.msk.f32.gmra.mrb[10].mxu0 %vm487_vm1, %v7753_v55 }
  0xbc   : > { %5924 = vmatprep.mubr.msk.f32.mxu0 %vm487_vm1, %v7755_v56 }
  0xbf   : > { %5925 = vmatmul.mubr.msk.f32.gmra.mrb[12].mxu0 %vm487_vm1, %v7769_v59 }
  0xc0   : > { %5927 = vmatprep.mubr.msk.f32.mxu0 %vm487_vm1, %v7771_v60 }
  0xc3   : > { %5928 = vmatmul.mubr.msk.f32.gmra.mrb[14].mxu0 %vm487_vm1, %v7785_v63 }
  0xc4   : > { %5930 = vmatprep.mubr.msk.f32.mxu0 %vm487_vm1, %v7787_v0 }
  0xc7   : > { %5931 = vmatmul.mubr.msk.f32.gmra.mrb[16].mxu0 %vm487_vm1, %v7801_v3 }
  0xc8   : > { %5933 = vmatprep.mubr.msk.f32.mxu0 %vm487_vm1, %v7936_v29 }
  0xcb   : > { %5934 = vmatmul.mubr.msk.f32.gmra.mrb[18].mxu0 %vm487_vm1, %v7942_v30 }
  0xcc   : > { %5938 = vmatprep.mubr.msk.f32.mxu0 %vm487_vm1, %v7687_v39  ;;  %v5163_v39 = vld [vmem:[%s8981_s3 + $0x20] sm:$0xf] }
  0xcf   : > { %5939 = vmatmul.mubr.msk.f32.vlgmr.msra.gmra.mrb[0].mxu0 %vm487_vm1, %v7691_v41  ;;  %v2422_v41 = vld [vmem:[#allocation2 + $0x111] sm:$0xff] }
  0xd0   : > { %5969 = vmatpush3.msk.msra.mxu0 %vm655_vm4, %v5097_v28  ;;  %5941 = vmatprep.mubr.msk.f32.mxu0 %vm487_vm1, %v7695_v42 }
  0xd1   : > { %6000 = vmatprep.subr.msk.mxu0 %vm655_vm4, %v5119_v31 }
  0xd3   : > { %5942 = vmatmul.mubr.msk.f32.gmra.mrb[2].mxu0 %vm487_vm1, %v7709_v45 }
  0xd4   : > { %5944 = vmatprep.mubr.msk.f32.mxu0 %vm487_vm1, %v7711_v46 }
  0xd7   : > { %5945 = vmatmul.mubr.msk.f32.gmra.mrb[4].mxu0 %vm487_vm1, %v7725_v49 }
  0xd8   : > { %5947 = vmatprep.mubr.msk.f32.mxu0 %vm487_vm1, %v7727_v50 }
  0xdb   : > { %5948 = vmatmul.mubr.msk.f32.gmra.mrb[6].mxu0 %vm487_vm1, %v7741_v53 }
  0xdc   : > { %5950 = vmatprep.mubr.msk.f32.mxu0 %vm487_vm1, %v7743_v54 }
  0xdf   : > { %5951 = vmatmul.mubr.msk.f32.gmra.mrb[8].mxu0 %vm487_vm1, %v7757_v57 }
  0xe0   : > { %5953 = vmatprep.mubr.msk.f32.mxu0 %vm487_vm1, %v7759_v58 }
  0xe3   : > { %5954 = vmatmul.mubr.msk.f32.gmra.mrb[10].mxu0 %vm487_vm1, %v7773_v61 }
  0xe4   : > { %5956 = vmatprep.mubr.msk.f32.mxu0 %vm487_vm1, %v7775_v62 }
  0xe7   : > { %5957 = vmatmul.mubr.msk.f32.gmra.mrb[12].mxu0 %vm487_vm1, %v7789_v1 }
  0xe8   : > { %5959 = vmatprep.mubr.msk.f32.mxu0 %vm487_vm1, %v7791_v2 }
  0xeb   : > { %5960 = vmatmul.mubr.msk.f32.gmra.mrb[14].mxu0 %vm487_vm1, %v7803_v5 }
  0xec   : > { %5962 = vmatprep.mubr.msk.f32.mxu0 %vm487_vm1, %v7805_v6 }
  0xef   : > { %5963 = vmatmul.mubr.msk.f32.gmra.mrb[16].mxu0 %vm487_vm1, %v7816_v9 }
  0xf0   : > { %5965 = vmatprep.mubr.msk.f32.mxu0 %vm487_vm1, %v7985_v32 }
  0xf3   : > { %5966 = vmatmul.mubr.msk.f32.gmra.mrb[18].mxu0 %vm487_vm1, %v7991_v33 }
  0xf4   : > { %5970 = vmatprep.mubr.msk.f32.mxu0 %vm487_vm1, %v7814_v8 }
  0xf7   : > { %5971 = vmatmul.mubr.msk.f32.vlgmr.msra.gmra.mrb[0].mxu0 %vm487_vm1, %v7828_v11 }
  0xf8   : > { %6001 = vmatpush3.msk.msra.mxu0 %vm655_vm4, %v5119_v31  ;;  %5973 = vmatprep.mubr.msk.f32.mxu0 %vm487_vm1, %v7830_v12 }
  0xf9   : > { %6032 = vmatprep.subr.msk.mxu0 %vm655_vm4, %v5141_v34 }
  0xfb   : > { %5974 = vmatmul.mubr.msk.f32.gmra.mrb[2].mxu0 %vm487_vm1, %v7837_v13 }
  0xfc   : > { %5976 = vmatprep.mubr.msk.f32.mxu0 %vm487_vm1, %v7839_v14 }
  0xff   : > { %5977 = vmatmul.mubr.msk.f32.gmra.mrb[4].mxu0 %vm487_vm1, %v7845_v15 }
 0x100   : > { %5979 = vmatprep.mubr.msk.f32.mxu0 %vm487_vm1, %v7847_v16 }
 0x103   : > { %5980 = vmatmul.mubr.msk.f32.gmra.mrb[6].mxu0 %vm487_vm1, %v7853_v17 }
 0x104   : > { %5982 = vmatprep.mubr.msk.f32.mxu0 %vm487_vm1, %v7855_v18 }
 0x107   : > { %5983 = vmatmul.mubr.msk.f32.gmra.mrb[8].mxu0 %vm487_vm1, %v7861_v19 }
 0x108   : > { %5985 = vmatprep.mubr.msk.f32.mxu0 %vm487_vm1, %v7863_v20 }
 0x10b   : > { %5986 = vmatmul.mubr.msk.f32.gmra.mrb[10].mxu0 %vm487_vm1, %v7869_v21 }
 0x10c   : > { %5988 = vmatprep.mubr.msk.f32.mxu0 %vm487_vm1, %v7871_v22 }
 0x10f   : > { %5989 = vmatmul.mubr.msk.f32.gmra.mrb[12].mxu0 %vm487_vm1, %v7877_v23 }
 0x110   : > { %5991 = vmatprep.mubr.msk.f32.mxu0 %vm487_vm1, %v7879_v24 }
 0x113   : > { %5992 = vmatmul.mubr.msk.f32.gmra.mrb[14].mxu0 %vm487_vm1, %v7885_v25 }
 0x114   : > { %5994 = vmatprep.mubr.msk.f32.mxu0 %vm487_vm1, %v7887_v26 }
 0x117   : > { %5995 = vmatmul.mubr.msk.f32.gmra.mrb[16].mxu0 %vm487_vm1, %v7893_v27 }
 0x118   : > { %5997 = vmatprep.mubr.msk.f32.mxu0 %vm487_vm1, %v8034_v35 }
 0x11b   : > { %5998 = vmatmul.mubr.msk.f32.gmra.mrb[18].mxu0 %vm487_vm1, %v8040_v36 }
 0x11c   : > { %6002 = vmatprep.mubr.msk.f32.mxu0 %vm487_vm1, %v7677_v37  ;;  %v2151_v37 = vld [vmem:[#allocation2 + $0x108] sm:$0xff] }
 0x11f   : > { %6003 = vmatmul.mubr.msk.f32.vlgmr.msra.gmra.mrb[0].mxu0 %vm487_vm1, %v7685_v38  ;;  %v2152_v38 = vld [vmem:[#allocation2 + $0x110] sm:$0xff] }
 0x120   : > { %6033 = vmatpush3.msk.msra.mxu0 %vm655_vm4, %v5141_v34  ;;  %6005 = vmatprep.mubr.msk.f32.mxu0 %vm487_vm1, %v7689_v40  ;;  %v2421_v40 = vld [vmem:[#allocation2 + $0x109] sm:$0xff] }
 0x121   : > { %6064 = vmatprep.subr.msk.mxu0 %vm655_vm4, %v5163_v39 }
 0x123   : > { %6006 = vmatmul.mubr.msk.f32.gmra.mrb[2].mxu0 %vm487_vm1, %v7705_v43  ;;  %v2692_v43 = vld [vmem:[#allocation2 + $0x112] sm:$0xff] }
 0x124   : > { %6008 = vmatprep.mubr.msk.f32.mxu0 %vm487_vm1, %v7707_v44 }
 0x127   : > { %6009 = vmatmul.mubr.msk.f32.gmra.mrb[4].mxu0 %vm487_vm1, %v7721_v47 }
 0x128   : > { %6011 = vmatprep.mubr.msk.f32.mxu0 %vm487_vm1, %v7723_v48 }
 0x129   : > { %v5815_v44 = vpop.f32.mrb[0].mxu1 }
 0x12b   : > { %6012 = vmatmul.mubr.msk.f32.gmra.mrb[6].mxu0 %vm487_vm1, %v7737_v51 }
 0x12c   : > { %6014 = vmatprep.mubr.msk.f32.mxu0 %vm487_vm1, %v7739_v52 }
 0x12f   : > { %6015 = vmatmul.mubr.msk.f32.gmra.mrb[8].mxu0 %vm487_vm1, %v7753_v55 }
 0x130   : > { %6017 = vmatprep.mubr.msk.f32.mxu0 %vm487_vm1, %v7755_v56 }
 0x133   : > { %6018 = vmatmul.mubr.msk.f32.gmra.mrb[10].mxu0 %vm487_vm1, %v7769_v59 }
 0x134   : > { %6020 = vmatprep.mubr.msk.f32.mxu0 %vm487_vm1, %v7771_v60 }
 0x137   : > { %6021 = vmatmul.mubr.msk.f32.gmra.mrb[12].mxu0 %vm487_vm1, %v7785_v63 }
 0x138   : > { %6023 = vmatprep.mubr.msk.f32.mxu0 %vm487_vm1, %v7787_v0 }
 0x13b   : > { %6024 = vmatmul.mubr.msk.f32.gmra.mrb[14].mxu0 %vm487_vm1, %v7801_v3 }
 0x13c   : > { %6026 = vmatprep.mubr.msk.f32.mxu0 %vm487_vm1, %v7936_v29 }
 0x13f   : > { %6027 = vmatmul.mubr.msk.f32.gmra.mrb[16].mxu0 %vm487_vm1, %v7942_v30 }
 0x140   : > { %6029 = vmatprep.mubr.msk.f32.mxu0 %vm487_vm1, %v2151_v37 }
 0x143   : > { %6030 = vmatmul.mubr.msk.f32.gmra.mrb[18].mxu0 %vm487_vm1, %v2152_v38 }
 0x144   : > { %6034 = vmatprep.mubr.msk.f32.mxu0 %vm487_vm1, %v7695_v42  ;;  %v2691_v42 = vld [vmem:[#allocation2 + $0x10a] sm:$0xff] }
 0x147   : > { %6035 = vmatmul.mubr.msk.f32.vlgmr.msra.gmra.mrb[0].mxu0 %vm487_vm1, %v7709_v45  ;;  %v735_v45 = vpop.f32.mrb[1].mxu1 }
 0x148   : > { %6065 = vmatpush3.msk.msra.mxu0 %vm655_vm4, %v5163_v39  ;;  %6037 = vmatprep.mubr.msk.f32.mxu0 %vm487_vm1, %v7711_v46  ;;  %v5818_v46 = vpop.f32.mrb[2].mxu1 }
 0x149   : > { %v745_v47 = vpop.f32.mrb[3].mxu1 }
 0x14a   : > { %v5821_v48 = vpop.f32.mrb[4].mxu1 }
 0x14b   : > { %6038 = vmatmul.mubr.msk.f32.gmra.mrb[2].mxu0 %vm487_vm1, %v7725_v49  ;;  %v755_v49 = vpop.f32.mrb[5].mxu1 }
 0x14c   : > { %6040 = vmatprep.mubr.msk.f32.mxu0 %vm487_vm1, %v7727_v50  ;;  %v5824_v50 = vpop.f32.mrb[6].mxu1 }
 0x14d   : > { %v765_v51 = vpop.f32.mrb[7].mxu1 }
 0x14e   : > { %v5827_v52 = vpop.f32.mrb[8].mxu1 }
 0x14f   : > { %6041 = vmatmul.mubr.msk.f32.gmra.mrb[4].mxu0 %vm487_vm1, %v7741_v53  ;;  %v775_v53 = vpop.f32.mrb[9].mxu1 }
 0x150   : > { %6043 = vmatprep.mubr.msk.f32.mxu0 %vm487_vm1, %v7743_v54  ;;  %v8164_v54 = vpop.f32.mrb[10].mxu1 }
 0x151   : > { %v8166_v55 = vpop.f32.mrb[11].mxu1 }
 0x152   : > { %v8168_v56 = vpop.f32.mrb[12].mxu1 }
 0x153   : > { %6044 = vmatmul.mubr.msk.f32.gmra.mrb[6].mxu0 %vm487_vm1, %v7757_v57  ;;  %v8170_v57 = vpop.f32.mrb[13].mxu1 }
 0x154   : > { %6046 = vmatprep.mubr.msk.f32.mxu0 %vm487_vm1, %v7759_v58  ;;  %v8172_v58 = vpop.f32.mrb[14].mxu1 }
 0x155   : > { %v8174_v59 = vpop.f32.mrb[15].mxu1 }
 0x156   : > { %v8176_v60 = vpop.f32.mrb[16].mxu1 }
 0x157   : > { %6047 = vmatmul.mubr.msk.f32.gmra.mrb[8].mxu0 %vm487_vm1, %v7773_v61  ;;  %v8178_v61 = vpop.f32.mrb[17].mxu1 }
 0x158   : > { %6049 = vmatprep.mubr.msk.f32.mxu0 %vm487_vm1, %v7775_v62  ;;  %v8183_v62 = vld [vmem:[%s8982_s4] ss:$0 sm:$0xff] }
 0x15b   : > { %6050 = vmatmul.mubr.msk.f32.gmra.mrb[10].mxu0 %vm487_vm1, %v7789_v1 }
 0x15c   : > { %6052 = vmatprep.mubr.msk.f32.mxu0 %vm487_vm1, %v7791_v2 }
 0x15f   : > { %6053 = vmatmul.mubr.msk.f32.gmra.mrb[12].mxu0 %vm487_vm1, %v7803_v5 }
 0x160   : > { %6055 = vmatprep.mubr.msk.f32.mxu0 %vm487_vm1, %v7805_v6 }
 0x163   : > { %6056 = vmatmul.mubr.msk.f32.gmra.mrb[14].mxu0 %vm487_vm1, %v7816_v9 }
 0x164   : > { %6058 = vmatprep.mubr.msk.f32.mxu0 %vm487_vm1, %v7985_v32 }
 0x167   : > { %6059 = vmatmul.mubr.msk.f32.gmra.mrb[16].mxu0 %vm487_vm1, %v7991_v33 }
 0x168   : > { %6061 = vmatprep.mubr.msk.f32.mxu0 %vm487_vm1, %v2421_v40 }
 0x16b   : > { %6062 = vmatmul.mubr.msk.f32.gmra.mrb[18].mxu0 %vm487_vm1, %v2422_v41 }
 0x16c   : > { %6066 = vmatprep.mubr.msk.f32.mxu0 %vm487_vm1, %v7830_v12 }
 0x16f   : > { %6067 = vmatmul.mubr.msk.f32.vlgmr.msra.gmra.mrb[0].mxu0 %vm487_vm1, %v7837_v13 }
 0x170   : > { %6069 = vmatprep.mubr.msk.f32.mxu0 %vm487_vm1, %v7839_v14 }
 0x173   : > { %6070 = vmatmul.mubr.msk.f32.gmra.mrb[2].mxu0 %vm487_vm1, %v7845_v15 }
 0x174   : > { %6072 = vmatprep.mubr.msk.f32.mxu0 %vm487_vm1, %v7847_v16 }
 0x177   : > { %6073 = vmatmul.mubr.msk.f32.gmra.mrb[4].mxu0 %vm487_vm1, %v7853_v17 }
 0x178   : > { %6075 = vmatprep.mubr.msk.f32.mxu0 %vm487_vm1, %v7855_v18 }
 0x17b   : > { %6076 = vmatmul.mubr.msk.f32.gmra.mrb[6].mxu0 %vm487_vm1, %v7861_v19 }
 0x17c   : > { %6078 = vmatprep.mubr.msk.f32.mxu0 %vm487_vm1, %v7863_v20 }
 0x17f   : > { %6079 = vmatmul.mubr.msk.f32.gmra.mrb[8].mxu0 %vm487_vm1, %v7869_v21 }
 0x180   : > { %6081 = vmatprep.mubr.msk.f32.mxu0 %vm487_vm1, %v7871_v22 }
 0x183   : > { %6082 = vmatmul.mubr.msk.f32.gmra.mrb[10].mxu0 %vm487_vm1, %v7877_v23 }
 0x184   : > { %6084 = vmatprep.mubr.msk.f32.mxu0 %vm487_vm1, %v7879_v24 }
 0x187   : > { %6085 = vmatmul.mubr.msk.f32.gmra.mrb[12].mxu0 %vm487_vm1, %v7885_v25 }
 0x188   : > { %6087 = vmatprep.mubr.msk.f32.mxu0 %vm487_vm1, %v7887_v26 }
 0x18b   : > { %6088 = vmatmul.mubr.msk.f32.gmra.mrb[14].mxu0 %vm487_vm1, %v7893_v27 }
 0x18c   : > { %6090 = vmatprep.mubr.msk.f32.mxu0 %vm487_vm1, %v8034_v35 }
 0x18f   : > { %6091 = vmatmul.mubr.msk.f32.gmra.mrb[16].mxu0 %vm487_vm1, %v8040_v36 }
 0x190   : > { %6093 = vmatprep.mubr.msk.f32.mxu0 %vm487_vm1, %v2691_v42 }
 0x193   : > { %6094 = vmatmul.mubr.msk.f32.gmra.mrb[18].mxu0 %vm487_vm1, %v2692_v43 }
 0x242   : > { %v6068_v63 = vpop.f32.mrb[0].mxu0 }
 0x243   : > { %v2951_v0 = vadd.f32 %v6068_v63, %v8183_v62  ;;  %v2824_v1 = vpop.f32.mrb[1].mxu0 }
 0x244   : > { %v2950_v2 = vadd.f32 %v8183_v62, %v2824_v1 }
 0x245   : > { %v2971_v3 = vmax.f32 %v2951_v0, 0.0 }
 0x246   : > { %v2970_v4 = vmax.f32 %v2950_v2, 0.0  ;;  %v6071_v5 = vpop.f32.mrb[2].mxu0 }
 0x247   : > { %3011 = vst [vmem:[#allocation3 + $0x9] sm:$0xff] %v2971_v3  ;;  %v6890_v6 = vadd.f32 %v6071_v5, %v5815_v44  ;;  %v2834_v7 = vpop.f32.mrb[3].mxu0 }
 0x248   : > { %3010 = vst [vmem:[#allocation3 + $0x1] sm:$0xff] %v2970_v4  ;;  %v6891_v8 = vadd.f32 %v2834_v7, %v735_v45 }
 0x249   : > { %v2953_v9 = vadd.f32 %v6890_v6, %v8183_v62 }
 0x24a   : > { %v2952_v10 = vadd.f32 %v6891_v8, %v8183_v62  ;;  %v6074_v11 = vpop.f32.mrb[4].mxu0 }
 0x24b   : > { %v2973_v12 = vmax.f32 %v2953_v9, 0.0  ;;  %v6892_v13 = vadd.f32 %v6074_v11, %v5818_v46  ;;  %v2844_v14 = vpop.f32.mrb[5].mxu0 }
 0x24c   : > { %v2972_v15 = vmax.f32 %v2952_v10, 0.0  ;;  %v6893_v16 = vadd.f32 %v2844_v14, %v745_v47 }
 0x24d   : > { %3013 = vst [vmem:[#allocation3 + $0x21] sm:$0xff] %v2973_v12  ;;  %v2955_v17 = vadd.f32 %v6892_v13, %v8183_v62 }
 0x24e   : > { %3012 = vst [vmem:[#allocation3 + $0x19] sm:$0xff] %v2972_v15  ;;  %v2954_v18 = vadd.f32 %v6893_v16, %v8183_v62  ;;  %v6077_v19 = vpop.f32.mrb[6].mxu0  ;;  %v7355_v16 = vmov (!%p4985_p6), 0.0  }
 0x24f   : > { %v2975_v20 = vmax.f32 %v2955_v17, 0.0  ;;  %v6894_v21 = vadd.f32 %v6077_v19, %v5821_v48  ;;  %v2854_v22 = vpop.f32.mrb[7].mxu0  ;;  %3033 = vst [vmem:[#allocation3] sm:$0xff] (!%p4985_p6), %v7355_v16  ;;  %3034 = vst [vmem:[#allocation3 + $0x8] sm:$0xff] (!%p4985_p6), %v7355_v16 }
 0x250   : > { %v2974_v23 = vmax.f32 %v2954_v18, 0.0  ;;  %v6895_v24 = vadd.f32 %v2854_v22, %v755_v49  ;;  %3035 = vst [vmem:[#allocation3 + $0x10] sm:$0x3] (!%p4985_p6), %v7355_v16 }
 0x251   : > { %3015 = vst [vmem:[#allocation3 + $0x39] sm:$0xff] %v2975_v20  ;;  %v2957_v25 = vadd.f32 %v6894_v21, %v8183_v62 }
 0x252   : > { %3014 = vst [vmem:[#allocation3 + $0x31] sm:$0xff] %v2974_v23  ;;  %v2956_v26 = vadd.f32 %v6895_v24, %v8183_v62  ;;  %v6080_v27 = vpop.f32.mrb[8].mxu0 }
 0x253   : > { %v2977_v28 = vmax.f32 %v2957_v25, 0.0  ;;  %v6896_v29 = vadd.f32 %v6080_v27, %v5824_v50  ;;  %v2864_v30 = vpop.f32.mrb[9].mxu0 }
 0x254   : > { %v2976_v31 = vmax.f32 %v2956_v26, 0.0  ;;  %v6897_v32 = vadd.f32 %v2864_v30, %v765_v51 }
 0x255   : > { %3017 = vst [vmem:[#allocation3 + $0x51] sm:$0xff] %v2977_v28  ;;  %v2959_v33 = vadd.f32 %v6896_v29, %v8183_v62 }
 0x256   : > { %3016 = vst [vmem:[#allocation3 + $0x49] sm:$0xff] %v2976_v31  ;;  %v2958_v34 = vadd.f32 %v6897_v32, %v8183_v62  ;;  %v6083_v35 = vpop.f32.mrb[10].mxu0 }
 0x257   : > { %v2979_v36 = vmax.f32 %v2959_v33, 0.0  ;;  %v6898_v39 = vadd.f32 %v6083_v35, %v5827_v52  ;;  %v2874_v37 = vpop.f32.mrb[11].mxu0 }
 0x258   : > { %v2978_v38 = vmax.f32 %v2958_v34, 0.0  ;;  %v6899_v40 = vadd.f32 %v2874_v37, %v775_v53 }
 0x259   : > { %3019 = vst [vmem:[#allocation3 + $0x69] sm:$0xff] %v2979_v36  ;;  %v2961_v41 = vadd.f32 %v6898_v39, %v8183_v62 }
 0x25a   : > { %3018 = vst [vmem:[#allocation3 + $0x61] sm:$0xff] %v2978_v38  ;;  %v2960_v42 = vadd.f32 %v6899_v40, %v8183_v62  ;;  %v6086_v43 = vpop.f32.mrb[12].mxu0 }
 0x25b   : > { %v2981_v44 = vmax.f32 %v2961_v41, 0.0  ;;  %v6900_v45 = vadd.f32 %v6086_v43, %v8164_v54  ;;  %v2884_v46 = vpop.f32.mrb[13].mxu0 }
 0x25c   : > { %v2980_v47 = vmax.f32 %v2960_v42, 0.0  ;;  %v6901_v48 = vadd.f32 %v2884_v46, %v8166_v55 }
 0x25d   : > { %3021 = vst [vmem:[#allocation3 + $0x81] sm:$0xff] %v2981_v44  ;;  %v2963_v49 = vadd.f32 %v6900_v45, %v8183_v62 }
 0x25e   : > { %3020 = vst [vmem:[#allocation3 + $0x79] sm:$0xff] %v2980_v47  ;;  %v2962_v50 = vadd.f32 %v6901_v48, %v8183_v62  ;;  %v6089_v51 = vpop.f32.mrb[14].mxu0 }
 0x25f   : > { %v2983_v52 = vmax.f32 %v2963_v49, 0.0  ;;  %v6902_v53 = vadd.f32 %v6089_v51, %v8168_v56  ;;  %v2894_v63 = vpop.f32.mrb[15].mxu0 }
 0x260   : > { %v2982_v0 = vmax.f32 %v2962_v50, 0.0  ;;  %v6903_v1 = vadd.f32 %v2894_v63, %v8170_v57 }
 0x261   : > { %3023 = vst [vmem:[#allocation3 + $0x99] sm:$0xff] %v2983_v52  ;;  %v2965_v54 = vadd.f32 %v6902_v53, %v8183_v62 }
 0x262   : > { %3022 = vst [vmem:[#allocation3 + $0x91] sm:$0xff] %v2982_v0  ;;  %v2964_v55 = vadd.f32 %v6903_v1, %v8183_v62  ;;  %v6092_v2 = vpop.f32.mrb[16].mxu0 }
 0x263   : > { %v2985_v3 = vmax.f32 %v2965_v54, 0.0  ;;  %v6904_v4 = vadd.f32 %v6092_v2, %v8172_v58  ;;  %v2904_v5 = vpop.f32.mrb[17].mxu0 }
 0x264   : > { %v2984_v6 = vmax.f32 %v2964_v55, 0.0  ;;  %v6905_v7 = vadd.f32 %v2904_v5, %v8174_v59 }
 0x265   : > { %3025 = vst [vmem:[#allocation3 + $0xb1] sm:$0xff] %v2985_v3  ;;  %v2967_v56 = vadd.f32 %v6904_v4, %v8183_v62 }
 0x266   : > { %3024 = vst [vmem:[#allocation3 + $0xa9] sm:$0xff] %v2984_v6  ;;  %v2966_v57 = vadd.f32 %v6905_v7, %v8183_v62  ;;  %v6095_v8 = vpop.f32.mrb[18].mxu0 }
 0x267   : > { %v2987_v9 = vmax.f32 %v2967_v56, 0.0  ;;  %v6906_v10 = vadd.f32 %v6095_v8, %v8176_v60  ;;  %v2914_v11 = vpop.f32.mrb[19].mxu0 }
 0x268   : > { %v2986_v12 = vmax.f32 %v2966_v57, 0.0  ;;  %v6907_v13 = vadd.f32 %v2914_v11, %v8178_v61  ;;  %3032 = sbr.rel (%p4985_p6) target bundleno = 623 (0x26f), region = 68 }
 0x269   : > { %3027 = vst [vmem:[#allocation3 + $0xc9] sm:$0xff] %v2987_v9  ;;  %v2969_v58 = vadd.f32 %v6906_v10, %v8183_v62 }
 0x26a   : > { %3026 = vst [vmem:[#allocation3 + $0xc1] sm:$0xff] %v2986_v12  ;;  %v2968_v59 = vadd.f32 %v6907_v13, %v8183_v62 }
 0x26b   : > { %v2989_v14 = vmax.f32 %v2969_v58, 0.0 }
 0x26c   : > { %v2988_v15 = vmax.f32 %v2968_v59, 0.0 }
 0x26d   : > { %3029 = vst [vmem:[#allocation3 + $0xe1] sm:$0xff] %v2989_v14 }
 0x26e   : > { %3028 = vst [vmem:[#allocation3 + $0xd9] sm:$0xff] %v2988_v15 }
 0x26f PF: > { %3038 = sbr.rel (%p4987_p9) target bundleno = 630 (0x276), region = 72  ;;  %v7356_v60 = vmov (!%p4987_p9), 0.0  }
 0x270   : > { %3040 = vst [vmem:[#allocation3 + $0xd8] sm:$0xff] (!%p4987_p9), %v7356_v60  ;;  %3041 = vst [vmem:[#allocation3 + $0xe0] sm:$0xff] (!%p4987_p9), %v7356_v60 }
 0x271   : > { %3042 = vst [vmem:[#allocation3 + $0xe8] sm:$0x3] (!%p4987_p9), %v7356_v60 }
 0x276 PF: > { %v5188_v61 = vld [vmem:[%s8983_s5 + $0x80] sm:$0xff]  ;;  %v5189_v62 = vld [vmem:[%s8983_s5 + $0x88] sm:$0xff]  ;;  %v5190_v17 = vld [vmem:[%s8983_s5 + $0x90] sm:$0xff]  ;;  %s5330_s19 = sshll.u32 %s7334_s27, 4  ;;  %s5320_s22 = sshll.u32 %s7338_s28, 5 }
 0x277   : > { %v6600_v18 = vpack.c.bf16 %v5189_v62, %v5188_v61  ;;  %v5191_v19 = vld [vmem:[%s8983_s5 + $0x98] sm:$0xff]  ;;  %v5192_v21 = vld [vmem:[%s8983_s5 + $0xa0] sm:$0xff]  ;;  %v5193_v22 = vld [vmem:[%s8983_s5 + $0xa8] sm:$0xff]  ;;  %s4827_s9 = sadd.s32 %s5330_s19, %s5320_s22  ;;  %s4830_s28 = sshll.u32 %s7595_s15, 4  ;;  %s8920_s28 = int_to_ptr.vmem [resolvable:$true] %s4830_s28 }
 0x278   : > { %v6604_v20 = vpack.c.bf16 %v5191_v19, %v5190_v17  ;;  %v6608_v23 = vpack.c.bf16 %v5193_v22, %v5192_v21  ;;  %v3075_v24 = vld [vmem:[#allocation3 + $0x1] sm:$0xff]  ;;  %v5194_v25 = vld [vmem:[%s8983_s5 + $0xb0] sm:$0xff]  ;;  %v5195_v26 = vld [vmem:[%s8983_s5 + $0xb8] sm:$0xff]  ;;  %s5321_s27 = sshll.u32 %s4827_s9, 7  ;;  %s9005_s23 = sand.u32 1, %s7326_s25  }
 0x279   : > { %6601 = vmatprep.subr.bf16.mxu1 %v6600_v18  ;;  %6128 = vmatprep.mubr.f32.mxu1 %v3075_v24  ;;  %v6612_v27 = vpack.c.bf16 %v5195_v26, %v5194_v25  ;;  %v5196_v28 = vld [vmem:[%s8983_s5 + $0xc0] sm:$0xff]  ;;  %v5197_v29 = vld [vmem:[%s8983_s5 + $0xc8] sm:$0xff]  ;;  %v5198_v31 = vld [vmem:[%s8983_s5 + $0xd0] sm:$0xff]  ;;  %s8918_s20 = scalar_lea.hbm %s8985_s7, %s5321_s27  ;;  %s8926_s10 = scalar_lea.sflag [#allocation5], %s9005_s23 }
 0x27a   : > { %6603 = vmatpush3.bf16.msra.mxu1 %v6600_v18  ;;  %v6616_v30 = vpack.c.bf16 %v5197_v29, %v5196_v28  ;;  %v5199_v32 = vld [vmem:[%s8983_s5 + $0xd8] sm:$0xff]  ;;  %v5200_v34 = vld [vmem:[%s8983_s5 + $0xe0] sm:$0xff]  ;;  %v5201_v35 = vld [vmem:[%s8983_s5 + $0xe8] sm:$0xff]  ;;  %s7256_s13 = scalar_lea.vmem %s8920_s28, 2048  ;;  %s7357_s16 = smov [#allocation4]  }
 0x27b   : > { %6605 = vmatprep.subr.bf16.mxu1 %v6604_v20  ;;  %v6620_v33 = vpack.c.bf16 %v5199_v32, %v5198_v31  ;;  %v6624_v36 = vpack.c.bf16 %v5201_v35, %v5200_v34  ;;  %v5202_v39 = vld [vmem:[%s8983_s5 + $0xf0] sm:$0xff]  ;;  %v5203_v37 = vld [vmem:[%s8983_s5 + $0xf8] sm:$0xff]  ;;  %v3059_v40 = vld [vmem:[%s8983_s5] sm:$0xff]  ;;  %p7257_p10 = scmp.ne.s32.totalorder %s8920_s28, %s7256_s13  ;;  %s7260_s17 = sshll.u32 %s7357_s16, 4  ;;  %s7261_s17 = int_to_ptr.vmem [resolvable:$false] %s7260_s17 }
 0x27c   : > { %v6628_v38 = vpack.c.bf16 %v5203_v37, %v5202_v39  ;;  %v3060_v41 = vld [vmem:[%s8983_s5 + $0x8] sm:$0xff]  ;;  %v3061_v43 = vld [vmem:[%s8983_s5 + $0x10] sm:$0xff]  ;;  %v3062_v44 = vld [vmem:[%s8983_s5 + $0x18] sm:$0xff]  ;;  %s7262_s18 = scalar_lea.vmem %s7261_s17, 4096  ;;  %p7263_p13 = scmp.lt.s32.totalorder %s8920_s28, %s7261_s17 }
 0x27d   : > { %v6632_v42 = vpack.c.bf16 %v3060_v41, %v3059_v40  ;;  %v3076_v45 = vld [vmem:[#allocation3 + $0x9] sm:$0xff]  ;;  %v8277_v46 = vld [vmem:[#allocation3 + $0x19] sm:$0xff]  ;;  %v6636_v47 = vpack.c.bf16 %v3062_v44, %v3061_v43  ;;  %v8286_v50 = vld [vmem:[#allocation3 + $0x21] sm:$0xff]  ;;  %p7258_p11 = pnand %p7257_p10, %p7451_p3  ;;  %p7264_p0 = scmp.lt.s32.totalorder %s7262_s18, %s7256_s13 }
 0x27e   : > { %6607 = vmatpush3.bf16.msra.mxu1 %v6604_v20  ;;  %v3063_v48 = vld [vmem:[%s8983_s5 + $0x20] sm:$0xff]  ;;  %v3064_v49 = vld [vmem:[%s8983_s5 + $0x28] sm:$0xff]  ;;  %v8288_v51 = vld [vmem:[#allocation3 + $0x31] sm:$0xff] }
 0x27f   : > { %6609 = vmatprep.subr.bf16.mxu1 %v6608_v23  ;;  %v6640_v52 = vpack.c.bf16 %v3064_v49, %v3063_v48  ;;  %v3065_v53 = vld [vmem:[%s8983_s5 + $0x30] sm:$0xff]  ;;  %v3066_v63 = vld [vmem:[%s8983_s5 + $0x38] sm:$0xff]  ;;  %v3067_v55 = vld [vmem:[%s8983_s5 + $0x40] sm:$0xff]  ;;  %p7259_p12 = pneg %p7258_p11  ;;  %p7265_p1 = por %p7264_p0, %p7263_p13 }
 0x280   : > { %v8298_v0 = vld [vmem:[#allocation3 + $0x39] sm:$0xff]  ;;  %v8300_v1 = vld [vmem:[#allocation3 + $0x49] sm:$0xff]  ;;  %v6644_v54 = vpack.c.bf16 %v3066_v63, %v3065_v53  ;;  %v8310_v3 = vld [vmem:[#allocation3 + $0x51] sm:$0xff] }
 0x281   : > { %v3068_v2 = vld [vmem:[%s8983_s5 + $0x48] sm:$0xff]  ;;  %v3069_v6 = vld [vmem:[%s8983_s5 + $0x50] sm:$0xff]  ;;  %v3070_v7 = vld [vmem:[%s8983_s5 + $0x58] sm:$0xff]  ;;  %p7266_p2 = pnand %p7265_p1, %p7259_p12 }
 0x282   : > { %6611 = vmatpush3.bf16.msra.mxu1 %v6608_v23  ;;  %v8312_v4 = vld [vmem:[#allocation3 + $0x61] sm:$0xff]  ;;  %v6648_v5 = vpack.c.bf16 %v3068_v2, %v3067_v55  ;;  %v8322_v56 = vld [vmem:[#allocation3 + $0x69] sm:$0xff]  ;;  %v8324_v57 = vld [vmem:[#allocation3 + $0x79] sm:$0xff]  ;;  %v6652_v8 = vpack.c.bf16 %v3070_v7, %v3069_v6 }
 0x283   : > { %6613 = vmatprep.subr.bf16.mxu1 %v6612_v27  ;;  %v3071_v9 = vld [vmem:[%s8983_s5 + $0x60] sm:$0xff]  ;;  %v3072_v10 = vld [vmem:[%s8983_s5 + $0x68] sm:$0xff]  ;;  %v8336_v12 = vld [vmem:[#allocation3 + $0x91] sm:$0xff] }
 0x284   : > { %v8334_v11 = vld [vmem:[#allocation3 + $0x81] sm:$0xff]  ;;  %v6656_v13 = vpack.c.bf16 %v3072_v10, %v3071_v9  ;;  %v3073_v58 = vld [vmem:[%s8983_s5 + $0x70] sm:$0xff]  ;;  %v3074_v59 = vld [vmem:[%s8983_s5 + $0x78] sm:$0xff] }
 0x285   : > { %v8346_v14 = vld [vmem:[#allocation3 + $0x99] sm:$0xff]  ;;  %v8348_v15 = vld [vmem:[#allocation3 + $0xa9] sm:$0xff]  ;;  %v6660_v16 = vpack.c.bf16 %v3074_v59, %v3073_v58  ;;  %v8358_v62 = vld [vmem:[#allocation3 + $0xb1] sm:$0xff] }
 0x286   : > { %6615 = vmatpush3.bf16.msra.mxu1 %v6612_v27  ;;  %v5204_v60 = vld [vmem:[%s8983_s5 + $0x100] sm:$0xff]  ;;  %v5205_v61 = vld [vmem:[%s8983_s5 + $0x108] sm:$0xff]  ;;  %v5206_v19 = vld [vmem:[%s8983_s5 + $0x110] sm:$0xff] }
 0x287   : > { %6617 = vmatprep.subr.bf16.mxu1 %v6616_v30  ;;  %v3043_v17 = vld [vmem:[#allocation3] sm:$0xff]  ;;  %v6664_v18 = vpack.c.bf16 %v5205_v61, %v5204_v60  ;;  %v5207_v20 = vld [vmem:[%s8983_s5 + $0x118] sm:$0xff]  ;;  %v3044_v21 = vld [vmem:[#allocation3 + $0x8] sm:$0xff] }
 0x288   : > { %v8367_v22 = vld [vmem:[#allocation3 + $0x18] sm:$0xff]  ;;  %v6668_v23 = vpack.c.bf16 %v5207_v20, %v5206_v19  ;;  %v5208_v24 = vld [vmem:[%s8983_s5 + $0x120] sm:$0xff]  ;;  %v5209_v25 = vld [vmem:[%s8983_s5 + $0x128] sm:$0xff] }
 0x289   : > { %v8376_v26 = vld [vmem:[#allocation3 + $0x20] sm:$0xff]  ;;  %v8378_v27 = vld [vmem:[#allocation3 + $0x30] sm:$0xff]  ;;  %v6672_v28 = vpack.c.bf16 %v5209_v25, %v5208_v24  ;;  %v8388_v31 = vld [vmem:[#allocation3 + $0x38] sm:$0xff] }
 0x28a   : > { %6619 = vmatpush3.bf16.msra.mxu1 %v6616_v30  ;;  %v5210_v29 = vld [vmem:[%s8983_s5 + $0x130] sm:$0xff]  ;;  %v5211_v30 = vld [vmem:[%s8983_s5 + $0x138] sm:$0xff]  ;;  %v8390_v32 = vld [vmem:[#allocation3 + $0x48] sm:$0xff] }
 0x28b   : > { %6621 = vmatprep.subr.bf16.mxu1 %v6620_v33  ;;  %v5212_v34 = vld [vmem:[%s8983_s5 + $0x140] sm:$0xff]  ;;  %v5213_v35 = vld [vmem:[%s8983_s5 + $0x148] sm:$0xff]  ;;  %v5215_v40 = vld [vmem:[%s8983_s5 + $0x158] sm:$0xff] }
 0x28c   : > { %v8402_v39 = vld [vmem:[#allocation3 + $0x60] sm:$0xff]  ;;  %v6680_v37 = vpack.c.bf16 %v5213_v35, %v5212_v34  ;;  %v8412_v41 = vld [vmem:[#allocation3 + $0x68] sm:$0xff]  ;;  %v8426_v48 = vld [vmem:[#allocation3 + $0x90] sm:$0xff] }
 0x28d   : > { %v5216_v44 = vld [vmem:[%s8983_s5 + $0x160] sm:$0xff]  ;;  %v5219_v53 = vld [vmem:[%s8983_s5 + $0x178] sm:$0xff]  ;;  %v8448_v6 = vld [vmem:[#allocation3 + $0xb0] sm:$0xff] }
 0x28e   : > { %6623 = vmatpush3.bf16.msra.mxu1 %v6620_v33  ;;  %v6676_v33 = vpack.c.bf16 %v5211_v30, %v5210_v29  ;;  %v8436_v63 = vld [vmem:[#allocation3 + $0x98] sm:$0xff]  ;;  %v5220_v2 = vld [vmem:[%s8983_s5 + $0x180] sm:$0xff]  ;;  %v5222_v9 = vld [vmem:[%s8983_s5 + $0x190] sm:$0xff] }
 0x28f   : > { %6625 = vmatprep.subr.bf16.mxu1 %v6624_v36  ;;  %v3398_v7 = vld [vmem:[#allocation3 + $0x2] sm:$0xff]  ;;  %v5223_v10 = vld [vmem:[%s8983_s5 + $0x198] sm:$0xff]  ;;  %v5226_v19 = vld [vmem:[%s8983_s5 + $0x1b0] sm:$0xff] }
 0x290   : > { %v8457_v58 = vld [vmem:[#allocation3 + $0x1a] sm:$0xff]  ;;  %v6700_v59 = vpack.c.bf16 %v5223_v10, %v5222_v9  ;;  %v5225_v60 = vld [vmem:[%s8983_s5 + $0x1a8] sm:$0xff]  ;;  %v8490_v29 = vld [vmem:[#allocation3 + $0x52] sm:$0xff] }
 0x291   : > { %v8466_v61 = vld [vmem:[#allocation3 + $0x22] sm:$0xff]  ;;  %v5227_v20 = vld [vmem:[%s8983_s5 + $0x1b8] sm:$0xff]  ;;  %v5230_v34 = vld [vmem:[%s8983_s5 + $0x1d0] sm:$0xff] }
 0x292   : > { %6627 = vmatpush3.bf16.msra.mxu1 %v6624_v36  ;;  %v8400_v36 = vld [vmem:[#allocation3 + $0x50] sm:$0xff]  ;;  %v6708_v24 = vpack.c.bf16 %v5227_v20, %v5226_v19  ;;  %v5228_v25 = vld [vmem:[%s8983_s5 + $0x1c0] sm:$0xff]  ;;  %v5231_v35 = vld [vmem:[%s8983_s5 + $0x1d8] sm:$0xff] }
 0x293   : > { %6629 = vmatprep.subr.bf16.mxu1 %v6628_v38  ;;  %v8492_v30 = vld [vmem:[#allocation3 + $0x62] sm:$0xff]  ;;  %v8538_v10 = vld [vmem:[#allocation3 + $0xb2] sm:$0xff] }
 0x294   : > { %v5237_v9 = vld [vmem:[%s8983_s5 + $0x208] sm:$0xff] }
 0x295   : > { %v5241_v19 = vld [vmem:[%s8983_s5 + $0x228] sm:$0xff] }
 0x296   : > { %6631 = vmatpush3.bf16.msra.mxu1 %v6628_v38  ;;  %v5214_v38 = vld [vmem:[%s8983_s5 + $0x150] sm:$0xff] }
 0x297   : > { %6633 = vmatprep.subr.bf16.mxu1 %v6632_v42  ;;  %v6684_v43 = vpack.c.bf16 %v5215_v40, %v5214_v38  ;;  %v8504_v38 = vld [vmem:[#allocation3 + $0x7a] sm:$0xff]  ;;  %v6716_v40 = vpack.c.bf16 %v5231_v35, %v5230_v34  ;;  %v5246_v34 = vld [vmem:[%s8983_s5 + $0x250] sm:$0xff] }
 0x298   : > { %v5247_v35 = vld [vmem:[%s8983_s5 + $0x258] sm:$0xff] }
 0x299   : > { %6129 = vmatmul.mubr.f32.vlgmr.msra.gmra.mrb[18].mxu1 %v3076_v45  ;;  %v5217_v45 = vld [vmem:[%s8983_s5 + $0x168] sm:$0xff] }
 0x29a   : > { %6635 = vmatpush3.bf16.msra.mxu1 %v6632_v42  ;;  %6131 = vmatprep.mubr.f32.mxu1 %v8277_v46  ;;  %v8414_v42 = vld [vmem:[#allocation3 + $0x78] sm:$0xff]  ;;  %v6688_v49 = vpack.c.bf16 %v5217_v45, %v5216_v44  ;;  %v5233_v44 = vld [vmem:[%s8983_s5 + $0x1e8] sm:$0xff] }
 0x29b   : > { %6637 = vmatprep.subr.bf16.mxu1 %v6636_v47  ;;  %v8514_v45 = vld [vmem:[#allocation3 + $0x82] sm:$0xff] }
 0x29d   : > { %6132 = vmatmul.mubr.f32.gmra.mrb[20].mxu1 %v8286_v50 }
 0x29e   : > { %6639 = vmatpush3.bf16.msra.mxu1 %v6636_v47  ;;  %6134 = vmatprep.mubr.f32.mxu1 %v8288_v51  ;;  %v8424_v47 = vld [vmem:[#allocation3 + $0x80] sm:$0xff] }
 0x29f   : > { %6641 = vmatprep.subr.bf16.mxu1 %v6640_v52 }
 0x2a1   : > { %6135 = vmatmul.mubr.f32.gmra.mrb[22].mxu1 %v8298_v0 }
 0x2a2   : > { %6643 = vmatpush3.bf16.msra.mxu1 %v6640_v52  ;;  %6137 = vmatprep.mubr.f32.mxu1 %v8300_v1  ;;  %v5218_v52 = vld [vmem:[%s8983_s5 + $0x170] sm:$0xff] }
 0x2a3   : > { %6645 = vmatprep.subr.bf16.mxu1 %v6644_v54  ;;  %v6692_v55 = vpack.c.bf16 %v5219_v53, %v5218_v52  ;;  %v5234_v53 = vld [vmem:[%s8983_s5 + $0x1f0] sm:$0xff] }
 0x2a5   : > { %6138 = vmatmul.mubr.f32.gmra.mrb[24].mxu1 %v8310_v3 }
 0x2a6   : > { %6647 = vmatpush3.bf16.msra.mxu1 %v6644_v54  ;;  %6140 = vmatprep.mubr.f32.mxu1 %v8312_v4  ;;  %v8438_v54 = vld [vmem:[#allocation3 + $0xa8] sm:$0xff] }
 0x2a7   : > { %6649 = vmatprep.subr.bf16.mxu1 %v6648_v5 }
 0x2a9   : > { %6141 = vmatmul.mubr.f32.gmra.mrb[26].mxu1 %v8322_v56 }
 0x2aa   : > { %6651 = vmatpush3.bf16.msra.mxu1 %v6648_v5  ;;  %6143 = vmatprep.mubr.f32.mxu1 %v8324_v57  ;;  %v5221_v5 = vld [vmem:[%s8983_s5 + $0x188] sm:$0xff] }
 0x2ab   : > { %6653 = vmatprep.subr.bf16.mxu1 %v6652_v8 }
 0x2ad   : > { %6144 = vmatmul.mubr.f32.gmra.mrb[28].mxu1 %v8334_v11 }
 0x2ae   : > { %6655 = vmatpush3.bf16.msra.mxu1 %v6652_v8  ;;  %6146 = vmatprep.mubr.f32.mxu1 %v8336_v12  ;;  %v6696_v8 = vpack.c.bf16 %v5221_v5, %v5220_v2  ;;  %v8526_v2 = vld [vmem:[#allocation3 + $0x9a] sm:$0xff]  ;;  %v8528_v5 = vld [vmem:[#allocation3 + $0xaa] sm:$0xff] }
 0x2af   : > { %6657 = vmatprep.subr.bf16.mxu1 %v6656_v13 }
 0x2b1   : > { %6147 = vmatmul.mubr.f32.gmra.mrb[30].mxu1 %v8346_v14 }
 0x2b2   : > { %6659 = vmatpush3.bf16.msra.mxu1 %v6656_v13  ;;  %6149 = vmatprep.mubr.f32.mxu1 %v8348_v15  ;;  %v3399_v13 = vld [vmem:[#allocation3 + $0xa] sm:$0xff] }
 0x2b3   : > { %6661 = vmatprep.subr.bf16.mxu1 %v6660_v16 }
 0x2b5   : > { %6150 = vmatmul.mubr.f32.gmra.mrb[32].mxu1 %v8358_v62 }
 0x2b6   : > { %6663 = vmatpush3.bf16.msra.mxu1 %v6660_v16  ;;  %6184 = vmatprep.mubr.f32.mxu1 %v3043_v17  ;;  %v5224_v16 = vld [vmem:[%s8983_s5 + $0x1a0] sm:$0xff]  ;;  %v8468_v17 = vld [vmem:[#allocation3 + $0x32] sm:$0xff] }
 0x2b7   : > { %6665 = vmatprep.subr.bf16.mxu1 %v6664_v18 }
 0x2b9   : > { %6185 = vmatmul.mubr.f32.vlgmr.msra.gmra.mrb[18].mxu1 %v3044_v21  ;;  %v8478_v21 = vld [vmem:[#allocation3 + $0x3a] sm:$0xff] }
 0x2ba   : > { %6667 = vmatpush3.bf16.msra.mxu1 %v6664_v18  ;;  %6187 = vmatprep.mubr.f32.mxu1 %v8367_v22  ;;  %v6704_v18 = vpack.c.bf16 %v5225_v60, %v5224_v16  ;;  %v5239_v16 = vld [vmem:[%s8983_s5 + $0x218] sm:$0xff] }
 0x2bb   : > { %6669 = vmatprep.subr.bf16.mxu1 %v6668_v23 }
 0x2bd   : > { %6188 = vmatmul.mubr.f32.gmra.mrb[20].mxu1 %v8376_v26 }
 0x2be   : > { %6671 = vmatpush3.bf16.msra.mxu1 %v6668_v23  ;;  %6190 = vmatprep.mubr.f32.mxu1 %v8378_v27  ;;  %v8480_v23 = vld [vmem:[#allocation3 + $0x4a] sm:$0xff] }
 0x2bf   : > { %6673 = vmatprep.subr.bf16.mxu1 %v6672_v28 }
 0x2c1   : > { %6191 = vmatmul.mubr.f32.gmra.mrb[22].mxu1 %v8388_v31 }
 0x2c2   : > { %6675 = vmatpush3.bf16.msra.mxu1 %v6672_v28  ;;  %6193 = vmatprep.mubr.f32.mxu1 %v8390_v32  ;;  %v5229_v28 = vld [vmem:[%s8983_s5 + $0x1c8] sm:$0xff] }
 0x2c3   : > { %6677 = vmatprep.subr.bf16.mxu1 %v6676_v33 }
 0x2c5   : > { %6194 = vmatmul.mubr.f32.gmra.mrb[24].mxu1 %v8400_v36 }
 0x2c6   : > { %6679 = vmatpush3.bf16.msra.mxu1 %v6676_v33  ;;  %6196 = vmatprep.mubr.f32.mxu1 %v8402_v39  ;;  %v6712_v33 = vpack.c.bf16 %v5229_v28, %v5228_v25  ;;  %v5244_v25 = vld [vmem:[%s8983_s5 + $0x240] sm:$0xff]  ;;  %v5245_v28 = vld [vmem:[%s8983_s5 + $0x248] sm:$0xff] }
 0x2c7   : > { %6681 = vmatprep.subr.bf16.mxu1 %v6680_v37 }
 0x2c9   : > { %6197 = vmatmul.mubr.f32.gmra.mrb[26].mxu1 %v8412_v41 }
 0x2ca   : > { %6683 = vmatpush3.bf16.msra.mxu1 %v6680_v37  ;;  %6199 = vmatprep.mubr.f32.mxu1 %v8414_v42  ;;  %v8502_v37 = vld [vmem:[#allocation3 + $0x6a] sm:$0xff] }
 0x2cb   : > { %6685 = vmatprep.subr.bf16.mxu1 %v6684_v43 }
 0x2cd   : > { %6200 = vmatmul.mubr.f32.gmra.mrb[28].mxu1 %v8424_v47 }
 0x2ce   : > { %6687 = vmatpush3.bf16.msra.mxu1 %v6684_v43  ;;  %6202 = vmatprep.mubr.f32.mxu1 %v8426_v48  ;;  %v5232_v43 = vld [vmem:[%s8983_s5 + $0x1e0] sm:$0xff] }
 0x2cf   : > { %6689 = vmatprep.subr.bf16.mxu1 %v6688_v49  ;;  %v6720_v52 = vpack.c.bf16 %v5233_v44, %v5232_v43  ;;  %v5248_v43 = vld [vmem:[%s8983_s5 + $0x260] sm:$0xff]  ;;  %v5249_v44 = vld [vmem:[%s8983_s5 + $0x268] sm:$0xff] }
 0x2d1   : > { %6203 = vmatmul.mubr.f32.gmra.mrb[30].mxu1 %v8436_v63 }
 0x2d2   : > { %6691 = vmatpush3.bf16.msra.mxu1 %v6688_v49  ;;  %6205 = vmatprep.mubr.f32.mxu1 %v8438_v54  ;;  %v8516_v49 = vld [vmem:[#allocation3 + $0x92] sm:$0xff] }
 0x2d3   : > { %6693 = vmatprep.subr.bf16.mxu1 %v6692_v55 }
 0x2d5   : > { %6206 = vmatmul.mubr.f32.gmra.mrb[32].mxu1 %v8448_v6 }
 0x2d6   : > { %6695 = vmatpush3.bf16.msra.mxu1 %v6692_v55  ;;  %6240 = vmatprep.mubr.f32.mxu1 %v3398_v7  ;;  %v5235_v55 = vld [vmem:[%s8983_s5 + $0x1f8] sm:$0xff] }
 0x2d7   : > { %6697 = vmatprep.subr.bf16.mxu1 %v6696_v8  ;;  %v6724_v7 = vpack.c.bf16 %v5235_v55, %v5234_v53  ;;  %v5250_v53 = vld [vmem:[%s8983_s5 + $0x270] sm:$0xff]  ;;  %v5251_v55 = vld [vmem:[%s8983_s5 + $0x278] sm:$0xff] }
 0x2d9   : > { %6241 = vmatmul.mubr.f32.vlgmr.msra.gmra.mrb[18].mxu1 %v3399_v13 }
 0x2da   : > { %6699 = vmatpush3.bf16.msra.mxu1 %v6696_v8  ;;  %6243 = vmatprep.mubr.f32.mxu1 %v8457_v58  ;;  %v5236_v8 = vld [vmem:[%s8983_s5 + $0x200] sm:$0xff] }
 0x2db   : > { %6701 = vmatprep.subr.bf16.mxu1 %v6700_v59  ;;  %v6728_v13 = vpack.c.bf16 %v5237_v9, %v5236_v8  ;;  %v6756_v8 = vpack.c.bf16 %v5251_v55, %v5250_v53  ;;  %v5252_v9 = vld [vmem:[%s8983_s5 + $0x280] sm:$0xff]  ;;  %v5266_v53 = vld [vmem:[%s8983_s5 + $0x2f0] sm:$0xff]  ;;  %v5267_v55 = vld [vmem:[%s8983_s5 + $0x2f8] sm:$0xff] }
 0x2dd   : > { %6244 = vmatmul.mubr.f32.gmra.mrb[20].mxu1 %v8466_v61 }
 0x2de   : > { %6703 = vmatpush3.bf16.msra.mxu1 %v6700_v59  ;;  %6246 = vmatprep.mubr.f32.mxu1 %v8468_v17  ;;  %v5238_v59 = vld [vmem:[%s8983_s5 + $0x210] sm:$0xff] }
 0x2df   : > { %6705 = vmatprep.subr.bf16.mxu1 %v6704_v18  ;;  %v6732_v60 = vpack.c.bf16 %v5239_v16, %v5238_v59  ;;  %v8606_v59 = vld [vmem:[#allocation3 + $0xc8] sm:$0xff] }
 0x2e1   : > { %6247 = vmatmul.mubr.f32.gmra.mrb[22].mxu1 %v8478_v21 }
 0x2e2   : > { %6707 = vmatpush3.bf16.msra.mxu1 %v6704_v18  ;;  %6249 = vmatprep.mubr.f32.mxu1 %v8480_v23  ;;  %v5240_v18 = vld [vmem:[%s8983_s5 + $0x220] sm:$0xff] }
 0x2e3   : > { %6709 = vmatprep.subr.bf16.mxu1 %v6708_v24  ;;  %v6736_v20 = vpack.c.bf16 %v5241_v19, %v5240_v18  ;;  %v5255_v18 = vld [vmem:[%s8983_s5 + $0x298] sm:$0xff] }
 0x2e5   : > { %6250 = vmatmul.mubr.f32.gmra.mrb[24].mxu1 %v8490_v29 }
 0x2e6   : > { %6711 = vmatpush3.bf16.msra.mxu1 %v6708_v24  ;;  %6252 = vmatprep.mubr.f32.mxu1 %v8492_v30  ;;  %v5243_v24 = vld [vmem:[%s8983_s5 + $0x238] sm:$0xff] }
 0x2e7   : > { %6713 = vmatprep.subr.bf16.mxu1 %v6712_v33 }
 0x2e9   : > { %6253 = vmatmul.mubr.f32.gmra.mrb[26].mxu1 %v8502_v37 }
 0x2ea   : > { %6715 = vmatpush3.bf16.msra.mxu1 %v6712_v33  ;;  %6255 = vmatprep.mubr.f32.mxu1 %v8504_v38  ;;  %v6744_v33 = vpack.c.bf16 %v5245_v28, %v5244_v25  ;;  %v5260_v25 = vld [vmem:[%s8983_s5 + $0x2c0] sm:$0xff]  ;;  %v5261_v28 = vld [vmem:[%s8983_s5 + $0x2c8] sm:$0xff] }
 0x2eb   : > { %6717 = vmatprep.subr.bf16.mxu1 %v6716_v40 }
 0x2ed   : > { %6256 = vmatmul.mubr.f32.gmra.mrb[28].mxu1 %v8514_v45 }
 0x2ee   : > { %6719 = vmatpush3.bf16.msra.mxu1 %v6716_v40  ;;  %6258 = vmatprep.mubr.f32.mxu1 %v8516_v49  ;;  %v6748_v40 = vpack.c.bf16 %v5247_v35, %v5246_v34  ;;  %v5262_v34 = vld [vmem:[%s8983_s5 + $0x2d0] sm:$0xff]  ;;  %v5263_v35 = vld [vmem:[%s8983_s5 + $0x2d8] sm:$0xff] }
 0x2ef   : > { %6721 = vmatprep.subr.bf16.mxu1 %v6720_v52 }
 0x2f1   : > { %6259 = vmatmul.mubr.f32.gmra.mrb[30].mxu1 %v8526_v2 }
 0x2f2   : > { %6723 = vmatpush3.bf16.msra.mxu1 %v6720_v52  ;;  %6261 = vmatprep.mubr.f32.mxu1 %v8528_v5  ;;  %v6752_v52 = vpack.c.bf16 %v5249_v44, %v5248_v43  ;;  %v5264_v43 = vld [vmem:[%s8983_s5 + $0x2e0] sm:$0xff]  ;;  %v5265_v44 = vld [vmem:[%s8983_s5 + $0x2e8] sm:$0xff] }
 0x2f3   : > { %6725 = vmatprep.subr.bf16.mxu1 %v6724_v7 }
 0x2f5   : > { %6262 = vmatmul.mubr.f32.gmra.mrb[32].mxu1 %v8538_v10 }
 0x2f6   : > { %6727 = vmatpush3.bf16.msra.mxu1 %v6724_v7  ;;  %6296 = vmatprep.mubr.f32.mxu1 %v8367_v22  ;;  %v5242_v22 = vld [vmem:[%s8983_s5 + $0x230] sm:$0xff]  ;;  %v8596_v7 = vld [vmem:[#allocation3 + $0xc0] sm:$0xff] }
 0x2f7   : > { %6729 = vmatprep.subr.bf16.mxu1 %v6728_v13 }
 0x2f9   : > { %6297 = vmatmul.mubr.f32.vlgmr.msra.gmra.mrb[18].mxu1 %v8376_v26  ;;  %v6740_v26 = vpack.c.bf16 %v5243_v24, %v5242_v22  ;;  %v5257_v22 = vld [vmem:[%s8983_s5 + $0x2a8] sm:$0xff] }
 0x2fa   : > { %6731 = vmatpush3.bf16.msra.mxu1 %v6728_v13  ;;  %6299 = vmatprep.mubr.f32.mxu1 %v8378_v27  ;;  %v5253_v13 = vld [vmem:[%s8983_s5 + $0x288] sm:$0xff] }
 0x2fb   : > { %6733 = vmatprep.subr.bf16.mxu1 %v6732_v60  ;;  %v6760_v16 = vpack.c.bf16 %v5253_v13, %v5252_v9  ;;  %v6788_v9 = vpack.c.bf16 %v5267_v55, %v5266_v53  ;;  %v5268_v13 = vld [vmem:[%s8983_s5 + $0x300] sm:$0xff]  ;;  %v5282_v53 = vld [vmem:[%s8983_s5 + $0x370] sm:$0xff]  ;;  %v5283_v55 = vld [vmem:[%s8983_s5 + $0x378] sm:$0xff] }
 0x2fd   : > { %6300 = vmatmul.mubr.f32.gmra.mrb[20].mxu1 %v8388_v31 }
 0x2fe   : > { %6735 = vmatpush3.bf16.msra.mxu1 %v6732_v60  ;;  %6302 = vmatprep.mubr.f32.mxu1 %v8390_v32  ;;  %v5254_v60 = vld [vmem:[%s8983_s5 + $0x290] sm:$0xff] }
 0x2ff   : > { %6737 = vmatprep.subr.bf16.mxu1 %v6736_v20  ;;  %v6764_v19 = vpack.c.bf16 %v5255_v18, %v5254_v60  ;;  %v8674_v60 = vld [vmem:[#allocation3 + $0xc9] sm:$0xff] }
 0x301   : > { %6303 = vmatmul.mubr.f32.gmra.mrb[22].mxu1 %v8400_v36 }
 0x302   : > { %6739 = vmatpush3.bf16.msra.mxu1 %v6736_v20  ;;  %6305 = vmatprep.mubr.f32.mxu1 %v8402_v39  ;;  %v5256_v20 = vld [vmem:[%s8983_s5 + $0x2a0] sm:$0xff] }
 0x303   : > { %6741 = vmatprep.subr.bf16.mxu1 %v6740_v26  ;;  %v6768_v24 = vpack.c.bf16 %v5257_v22, %v5256_v20  ;;  %v5271_v20 = vld [vmem:[%s8983_s5 + $0x318] sm:$0xff] }
 0x305   : > { %6306 = vmatmul.mubr.f32.gmra.mrb[24].mxu1 %v8412_v41 }
 0x306   : > { %6743 = vmatpush3.bf16.msra.mxu1 %v6740_v26  ;;  %6308 = vmatprep.mubr.f32.mxu1 %v8414_v42  ;;  %v5259_v26 = vld [vmem:[%s8983_s5 + $0x2b8] sm:$0xff] }
 0x307   : > { %6745 = vmatprep.subr.bf16.mxu1 %v6744_v33 }
 0x309   : > { %6309 = vmatmul.mubr.f32.gmra.mrb[26].mxu1 %v8424_v47 }
 0x30a   : > { %6747 = vmatpush3.bf16.msra.mxu1 %v6744_v33  ;;  %6311 = vmatprep.mubr.f32.mxu1 %v8426_v48  ;;  %v6776_v33 = vpack.c.bf16 %v5261_v28, %v5260_v25  ;;  %v5276_v25 = vld [vmem:[%s8983_s5 + $0x340] sm:$0xff]  ;;  %v5277_v28 = vld [vmem:[%s8983_s5 + $0x348] sm:$0xff] }
 0x30b   : > { %6749 = vmatprep.subr.bf16.mxu1 %v6748_v40 }
 0x30d   : > { %6312 = vmatmul.mubr.f32.gmra.mrb[28].mxu1 %v8436_v63 }
 0x30e   : > { %6751 = vmatpush3.bf16.msra.mxu1 %v6748_v40  ;;  %6314 = vmatprep.mubr.f32.mxu1 %v8438_v54  ;;  %v6780_v40 = vpack.c.bf16 %v5263_v35, %v5262_v34  ;;  %v5278_v34 = vld [vmem:[%s8983_s5 + $0x350] sm:$0xff]  ;;  %v5279_v35 = vld [vmem:[%s8983_s5 + $0x358] sm:$0xff] }
 0x30f   : > { %6753 = vmatprep.subr.bf16.mxu1 %v6752_v52 }
 0x311   : > { %6315 = vmatmul.mubr.f32.gmra.mrb[30].mxu1 %v8448_v6 }
 0x312   : > { %6755 = vmatpush3.bf16.msra.mxu1 %v6752_v52  ;;  %6317 = vmatprep.mubr.f32.mxu1 %v8596_v7  ;;  %v6784_v52 = vpack.c.bf16 %v5265_v44, %v5264_v43  ;;  %v5280_v43 = vld [vmem:[%s8983_s5 + $0x360] sm:$0xff]  ;;  %v5281_v44 = vld [vmem:[%s8983_s5 + $0x368] sm:$0xff] }
 0x313   : > { %6757 = vmatprep.subr.bf16.mxu1 %v6756_v8 }
 0x315   : > { %6318 = vmatmul.mubr.f32.gmra.mrb[32].mxu1 %v8606_v59 }
 0x316   : > { %6759 = vmatpush3.bf16.msra.mxu1 %v6756_v8  ;;  %6352 = vmatprep.mubr.f32.mxu1 %v8277_v46  ;;  %v5258_v46 = vld [vmem:[%s8983_s5 + $0x2b0] sm:$0xff]  ;;  %v8664_v8 = vld [vmem:[#allocation3 + $0xc1] sm:$0xff] }
 0x317   : > { %6761 = vmatprep.subr.bf16.mxu1 %v6760_v16 }
 0x319   : > { %6353 = vmatmul.mubr.f32.vlgmr.msra.gmra.mrb[18].mxu1 %v8286_v50  ;;  %v6772_v50 = vpack.c.bf16 %v5259_v26, %v5258_v46  ;;  %v5273_v46 = vld [vmem:[%s8983_s5 + $0x328] sm:$0xff] }
 0x31a   : > { %6763 = vmatpush3.bf16.msra.mxu1 %v6760_v16  ;;  %6355 = vmatprep.mubr.f32.mxu1 %v8288_v51  ;;  %v5269_v16 = vld [vmem:[%s8983_s5 + $0x308] sm:$0xff] }
 0x31b   : > { %6765 = vmatprep.subr.bf16.mxu1 %v6764_v19  ;;  %v6792_v18 = vpack.c.bf16 %v5269_v16, %v5268_v13  ;;  %v6820_v13 = vpack.c.bf16 %v5283_v55, %v5282_v53  ;;  %v5284_v16 = vld [vmem:[%s8983_s5 + $0x380] sm:$0xff]  ;;  %v5305_v53 = vld [vmem:[%s8983_s5 + $0x428] sm:$0xff] }
 0x31d   : > { %6356 = vmatmul.mubr.f32.gmra.mrb[20].mxu1 %v8298_v0 }
 0x31e   : > { %6767 = vmatpush3.bf16.msra.mxu1 %v6764_v19  ;;  %6358 = vmatprep.mubr.f32.mxu1 %v8300_v1  ;;  %v5270_v19 = vld [vmem:[%s8983_s5 + $0x310] sm:$0xff] }
 0x31f   : > { %6769 = vmatprep.subr.bf16.mxu1 %v6768_v24  ;;  %v6796_v22 = vpack.c.bf16 %v5271_v20, %v5270_v19  ;;  %v8742_v19 = vld [vmem:[#allocation3 + $0xca] sm:$0xff] }
 0x321   : > { %6359 = vmatmul.mubr.f32.gmra.mrb[22].mxu1 %v8310_v3 }
 0x322   : > { %6771 = vmatpush3.bf16.msra.mxu1 %v6768_v24  ;;  %6361 = vmatprep.mubr.f32.mxu1 %v8312_v4  ;;  %v5272_v24 = vld [vmem:[%s8983_s5 + $0x320] sm:$0xff] }
 0x323   : > { %6773 = vmatprep.subr.bf16.mxu1 %v6772_v50  ;;  %v6800_v26 = vpack.c.bf16 %v5273_v46, %v5272_v24  ;;  %v5287_v24 = vld [vmem:[%s8983_s5 + $0x398] sm:$0xff] }
 0x325   : > { %6362 = vmatmul.mubr.f32.gmra.mrb[24].mxu1 %v8322_v56 }
 0x326   : > { %6775 = vmatpush3.bf16.msra.mxu1 %v6772_v50  ;;  %6364 = vmatprep.mubr.f32.mxu1 %v8324_v57  ;;  %v5275_v50 = vld [vmem:[%s8983_s5 + $0x338] sm:$0xff] }
 0x327   : > { %6777 = vmatprep.subr.bf16.mxu1 %v6776_v33 }
 0x329   : > { %6365 = vmatmul.mubr.f32.gmra.mrb[26].mxu1 %v8334_v11 }
 0x32a   : > { %6779 = vmatpush3.bf16.msra.mxu1 %v6776_v33  ;;  %6367 = vmatprep.mubr.f32.mxu1 %v8336_v12  ;;  %v6808_v33 = vpack.c.bf16 %v5277_v28, %v5276_v25  ;;  %v5293_v25 = vld [vmem:[%s8983_s5 + $0x3c8] sm:$0xff]  ;;  %v5295_v28 = vld [vmem:[%s8983_s5 + $0x3d8] sm:$0xff] }
 0x32b   : > { %6781 = vmatprep.subr.bf16.mxu1 %v6780_v40 }
 0x32d   : > { %6368 = vmatmul.mubr.f32.gmra.mrb[28].mxu1 %v8346_v14 }
 0x32e   : > { %6783 = vmatpush3.bf16.msra.mxu1 %v6780_v40  ;;  %6370 = vmatprep.mubr.f32.mxu1 %v8348_v15  ;;  %v6812_v40 = vpack.c.bf16 %v5279_v35, %v5278_v34  ;;  %v5299_v34 = vld [vmem:[%s8983_s5 + $0x3f8] sm:$0xff] }
 0x32f   : > { %6785 = vmatprep.subr.bf16.mxu1 %v6784_v52 }
 0x331   : > { %6371 = vmatmul.mubr.f32.gmra.mrb[30].mxu1 %v8358_v62 }
 0x332   : > { %6787 = vmatpush3.bf16.msra.mxu1 %v6784_v52  ;;  %6373 = vmatprep.mubr.f32.mxu1 %v8664_v8  ;;  %v6816_v52 = vpack.c.bf16 %v5281_v44, %v5280_v43  ;;  %v4191_v43 = vld [vmem:[#allocation3 + $0xe0] sm:$0xff]  ;;  %v5303_v44 = vld [vmem:[%s8983_s5 + $0x418] sm:$0xff] }
 0x333   : > { %6789 = vmatprep.subr.bf16.mxu1 %v6788_v9 }
 0x335   : > { %6374 = vmatmul.mubr.f32.gmra.mrb[32].mxu1 %v8674_v60 }
 0x336   : > { %6791 = vmatpush3.bf16.msra.mxu1 %v6788_v9  ;;  %6408 = vmatprep.mubr.f32.mxu1 %v8457_v58  ;;  %v5274_v58 = vld [vmem:[%s8983_s5 + $0x330] sm:$0xff]  ;;  %v8732_v9 = vld [vmem:[#allocation3 + $0xc2] sm:$0xff] }
 0x337   : > { %6793 = vmatprep.subr.bf16.mxu1 %v6792_v18 }
 0x339   : > { %6409 = vmatmul.mubr.f32.vlgmr.msra.gmra.mrb[18].mxu1 %v8466_v61  ;;  %v6804_v61 = vpack.c.bf16 %v5275_v50, %v5274_v58  ;;  %v5289_v58 = vld [vmem:[%s8983_s5 + $0x3a8] sm:$0xff] }
 0x33a   : > { %6795 = vmatpush3.bf16.msra.mxu1 %v6792_v18  ;;  %6411 = vmatprep.mubr.f32.mxu1 %v8468_v17  ;;  %v5285_v18 = vld [vmem:[%s8983_s5 + $0x388] sm:$0xff] }
 0x33b   : > { %6797 = vmatprep.subr.bf16.mxu1 %v6796_v22  ;;  %v6824_v20 = vpack.c.bf16 %v5285_v18, %v5284_v16  ;;  %v5309_v16 = vld [vmem:[%s8983_s5 + $0x448] sm:$0xff]  ;;  %v5311_v18 = vld [vmem:[%s8983_s5 + $0x458] sm:$0xff] }
 0x33d   : > { %6412 = vmatmul.mubr.f32.gmra.mrb[20].mxu1 %v8478_v21 }
 0x33e   : > { %6799 = vmatpush3.bf16.msra.mxu1 %v6796_v22  ;;  %6414 = vmatprep.mubr.f32.mxu1 %v8480_v23  ;;  %v5286_v22 = vld [vmem:[%s8983_s5 + $0x390] sm:$0xff] }
 0x33f   : > { %6801 = vmatprep.subr.bf16.mxu1 %v6800_v26  ;;  %v6828_v46 = vpack.c.bf16 %v5287_v24, %v5286_v22  ;;  %v5315_v22 = vld [vmem:[%s8983_s5 + $0x478] sm:$0xff] }
 0x341   : > { %6415 = vmatmul.mubr.f32.gmra.mrb[22].mxu1 %v8490_v29 }
 0x342   : > { %6803 = vmatpush3.bf16.msra.mxu1 %v6800_v26  ;;  %6417 = vmatprep.mubr.f32.mxu1 %v8492_v30  ;;  %v5288_v26 = vld [vmem:[%s8983_s5 + $0x3a0] sm:$0xff] }
 0x343   : > { %6805 = vmatprep.subr.bf16.mxu1 %v6804_v61  ;;  %v6832_v50 = vpack.c.bf16 %v5289_v58, %v5288_v26 }
 0x345   : > { %6418 = vmatmul.mubr.f32.gmra.mrb[24].mxu1 %v8502_v37 }
 0x346   : > { %6807 = vmatpush3.bf16.msra.mxu1 %v6804_v61  ;;  %6420 = vmatprep.mubr.f32.mxu1 %v8504_v38  ;;  %v5291_v61 = vld [vmem:[%s8983_s5 + $0x3b8] sm:$0xff] }
 0x347   : > { %6809 = vmatprep.subr.bf16.mxu1 %v6808_v33 }
 0x349   : > { %6421 = vmatmul.mubr.f32.gmra.mrb[26].mxu1 %v8514_v45 }
 0x34a   : > { %6811 = vmatpush3.bf16.msra.mxu1 %v6808_v33  ;;  %6423 = vmatprep.mubr.f32.mxu1 %v8516_v49  ;;  %v5297_v33 = vld [vmem:[%s8983_s5 + $0x3e8] sm:$0xff] }
 0x34b   : > { %6813 = vmatprep.subr.bf16.mxu1 %v6812_v40 }
 0x34d   : > { %6424 = vmatmul.mubr.f32.gmra.mrb[28].mxu1 %v8526_v2 }
 0x34e   : > { %6815 = vmatpush3.bf16.msra.mxu1 %v6812_v40  ;;  %6426 = vmatprep.mubr.f32.mxu1 %v8528_v5  ;;  %v5301_v40 = vld [vmem:[%s8983_s5 + $0x408] sm:$0xff] }
 0x34f   : > { %6817 = vmatprep.subr.bf16.mxu1 %v6816_v52 }
 0x351   : > { %6427 = vmatmul.mubr.f32.gmra.mrb[30].mxu1 %v8538_v10 }
 0x352   : > { %6819 = vmatpush3.bf16.msra.mxu1 %v6816_v52  ;;  %6429 = vmatprep.mubr.f32.mxu1 %v8732_v9 }
 0x353   : > { %6821 = vmatprep.subr.bf16.mxu1 %v6820_v13 }
 0x355   : > { %6430 = vmatmul.mubr.f32.gmra.mrb[32].mxu1 %v8742_v19 }
 0x356   : > { %6823 = vmatpush3.bf16.msra.mxu1 %v6820_v13  ;;  %6464 = vmatprep.mubr.f32.mxu1 %v8378_v27  ;;  %v5290_v27 = vld [vmem:[%s8983_s5 + $0x3b0] sm:$0xff]  ;;  %v5307_v13 = vld [vmem:[%s8983_s5 + $0x438] sm:$0xff] }
 0x357   : > { %6825 = vmatprep.subr.bf16.mxu1 %v6824_v20 }
 0x359   : > { %6465 = vmatmul.mubr.f32.vlgmr.msra.gmra.mrb[18].mxu1 %v8388_v31  ;;  %v6836_v31 = vpack.c.bf16 %v5291_v61, %v5290_v27 }
 0x35a   : > { %6827 = vmatpush3.bf16.msra.mxu1 %v6824_v20  ;;  %6467 = vmatprep.mubr.f32.mxu1 %v8390_v32  ;;  %v5292_v32 = vld [vmem:[%s8983_s5 + $0x3c0] sm:$0xff]  ;;  %v5313_v20 = vld [vmem:[%s8983_s5 + $0x468] sm:$0xff] }
 0x35b   : > { %6829 = vmatprep.subr.bf16.mxu1 %v6828_v46 }
 0x35d   : > { %6468 = vmatmul.mubr.f32.gmra.mrb[20].mxu1 %v8400_v36  ;;  %v6840_v36 = vpack.c.bf16 %v5293_v25, %v5292_v32 }
 0x35e   : > { %6831 = vmatpush3.bf16.msra.mxu1 %v6828_v46  ;;  %6470 = vmatprep.mubr.f32.mxu1 %v8402_v39  ;;  %v5294_v39 = vld [vmem:[%s8983_s5 + $0x3d0] sm:$0xff] }
 0x35f   : > { %6833 = vmatprep.subr.bf16.mxu1 %v6832_v50 }
 0x361   : > { %6471 = vmatmul.mubr.f32.gmra.mrb[22].mxu1 %v8412_v41  ;;  %v6844_v41 = vpack.c.bf16 %v5295_v28, %v5294_v39 }
 0x362   : > { %6835 = vmatpush3.bf16.msra.mxu1 %v6832_v50  ;;  %6473 = vmatprep.mubr.f32.mxu1 %v8414_v42  ;;  %v5296_v42 = vld [vmem:[%s8983_s5 + $0x3e0] sm:$0xff] }
 0x363   : > { %6837 = vmatprep.subr.bf16.mxu1 %v6836_v31 }
 0x365   : > { %6474 = vmatmul.mubr.f32.gmra.mrb[24].mxu1 %v8424_v47  ;;  %v6848_v47 = vpack.c.bf16 %v5297_v33, %v5296_v42 }
 0x366   : > { %6839 = vmatpush3.bf16.msra.mxu1 %v6836_v31  ;;  %6476 = vmatprep.mubr.f32.mxu1 %v8426_v48  ;;  %v5298_v48 = vld [vmem:[%s8983_s5 + $0x3f0] sm:$0xff] }
 0x367   : > { %6841 = vmatprep.subr.bf16.mxu1 %v6840_v36  ;;  %v6852_v35 = vpack.c.bf16 %v5299_v34, %v5298_v48 }
 0x369   : > { %6477 = vmatmul.mubr.f32.gmra.mrb[26].mxu1 %v8436_v63  ;;  %v4190_v63 = vld [vmem:[#allocation3 + $0xd8] sm:$0xff] }
 0x36a   : > { %6843 = vmatpush3.bf16.msra.mxu1 %v6840_v36  ;;  %6479 = vmatprep.mubr.f32.mxu1 %v8438_v54  ;;  %v5300_v54 = vld [vmem:[%s8983_s5 + $0x400] sm:$0xff] }
 0x36b   : > { %6845 = vmatprep.subr.bf16.mxu1 %v6844_v41 }
 0x36d   : > { %6480 = vmatmul.mubr.f32.gmra.mrb[28].mxu1 %v8448_v6  ;;  %v6856_v6 = vpack.c.bf16 %v5301_v40, %v5300_v54 }
 0x36e   : > { %6847 = vmatpush3.bf16.msra.mxu1 %v6844_v41  ;;  %6482 = vmatprep.mubr.f32.mxu1 %v8596_v7  ;;  %v5302_v7 = vld [vmem:[%s8983_s5 + $0x410] sm:$0xff] }
 0x36f   : > { %6849 = vmatprep.subr.bf16.mxu1 %v6848_v47  ;;  %v6860_v52 = vpack.c.bf16 %v5303_v44, %v5302_v7 }
 0x371   : > { %6483 = vmatmul.mubr.f32.gmra.mrb[30].mxu1 %v8606_v59  ;;  %v5304_v59 = vld [vmem:[%s8983_s5 + $0x420] sm:$0xff] }
 0x372   : > { %6851 = vmatpush3.bf16.msra.mxu1 %v6848_v47  ;;  %6485 = vmatprep.mubr.f32.mxu1 %v4190_v63  ;;  %v6864_v55 = vpack.c.bf16 %v5305_v53, %v5304_v59 }
 0x373   : > { %6853 = vmatprep.subr.bf16.mxu1 %v6852_v35 }
 0x375   : > { %6486 = vmatmul.mubr.f32.gmra.mrb[32].mxu1 %v4191_v43 }
 0x376   : > { %6855 = vmatpush3.bf16.msra.mxu1 %v6852_v35  ;;  %6520 = vmatprep.mubr.f32.mxu1 %v8288_v51  ;;  %v5306_v51 = vld [vmem:[%s8983_s5 + $0x430] sm:$0xff] }
 0x377   : > { %6857 = vmatprep.subr.bf16.mxu1 %v6856_v6 }
 0x379   : > { %6521 = vmatmul.mubr.f32.vlgmr.msra.gmra.mrb[18].mxu1 %v8298_v0  ;;  %v6868_v0 = vpack.c.bf16 %v5307_v13, %v5306_v51 }
 0x37a   : > { %6859 = vmatpush3.bf16.msra.mxu1 %v6856_v6  ;;  %6523 = vmatprep.mubr.f32.mxu1 %v8300_v1  ;;  %v5308_v1 = vld [vmem:[%s8983_s5 + $0x440] sm:$0xff] }
 0x37b   : > { %6861 = vmatprep.subr.bf16.mxu1 %v6860_v52 }
 0x37d   : > { %6524 = vmatmul.mubr.f32.gmra.mrb[20].mxu1 %v8310_v3  ;;  %v6872_v3 = vpack.c.bf16 %v5309_v16, %v5308_v1 }
 0x37e   : > { %6863 = vmatpush3.bf16.msra.mxu1 %v6860_v52  ;;  %6526 = vmatprep.mubr.f32.mxu1 %v8312_v4  ;;  %v5310_v4 = vld [vmem:[%s8983_s5 + $0x450] sm:$0xff] }
 0x37f   : > { %6865 = vmatprep.subr.bf16.mxu1 %v6864_v55 }
 0x381   : > { %6527 = vmatmul.mubr.f32.gmra.mrb[22].mxu1 %v8322_v56  ;;  %v6876_v56 = vpack.c.bf16 %v5311_v18, %v5310_v4 }
 0x382   : > { %6867 = vmatpush3.bf16.msra.mxu1 %v6864_v55  ;;  %6529 = vmatprep.mubr.f32.mxu1 %v8324_v57  ;;  %v5312_v57 = vld [vmem:[%s8983_s5 + $0x460] sm:$0xff] }
 0x383   : > { %6869 = vmatprep.subr.bf16.mxu1 %v6868_v0 }
 0x385   : > { %6530 = vmatmul.mubr.f32.gmra.mrb[24].mxu1 %v8334_v11  ;;  %v6880_v11 = vpack.c.bf16 %v5313_v20, %v5312_v57 }
 0x386   : > { %6871 = vmatpush3.bf16.msra.mxu1 %v6868_v0  ;;  %6532 = vmatprep.mubr.f32.mxu1 %v8336_v12  ;;  %v5314_v12 = vld [vmem:[%s8983_s5 + $0x470] sm:$0xff] }
 0x387   : > { %6873 = vmatprep.subr.bf16.mxu1 %v6872_v3  ;;  %v6884_v24 = vpack.c.bf16 %v5315_v22, %v5314_v12 }
 0x389   : > { %6533 = vmatmul.mubr.f32.gmra.mrb[26].mxu1 %v8346_v14  ;;  %v4384_v14 = vld [vmem:[#allocation3 + $0xd9] sm:$0xff] }
 0x38a   : > { %6875 = vmatpush3.bf16.msra.mxu1 %v6872_v3  ;;  %6535 = vmatprep.mubr.f32.mxu1 %v8348_v15  ;;  %v4385_v15 = vld [vmem:[#allocation3 + $0xe1] sm:$0xff] }
 0x38b   : > { %6877 = vmatprep.subr.bf16.mxu1 %v6876_v56 }
 0x38d   : > { %6536 = vmatmul.mubr.f32.gmra.mrb[28].mxu1 %v8358_v62  ;;  %v4578_v62 = vld [vmem:[#allocation3 + $0xda] sm:$0xff] }
 0x38e   : > { %6879 = vmatpush3.bf16.msra.mxu1 %v6876_v56  ;;  %6538 = vmatprep.mubr.f32.mxu1 %v8664_v8 }
 0x38f   : > { %6881 = vmatprep.subr.bf16.mxu1 %v6880_v11 }
 0x391   : > { %6539 = vmatmul.mubr.f32.gmra.mrb[30].mxu1 %v8674_v60 }
 0x392   : > { %6883 = vmatpush3.bf16.msra.mxu1 %v6880_v11  ;;  %6541 = vmatprep.mubr.f32.mxu1 %v4384_v14 }
 0x393   : > { %6885 = vmatprep.subr.bf16.mxu1 %v6884_v24 }
 0x395   : > { %6542 = vmatmul.mubr.f32.gmra.mrb[32].mxu1 %v4385_v15 }
 0x396   : > { %6887 = vmatpush3.bf16.msra.mxu1 %v6884_v24  ;;  %6576 = vmatprep.mubr.f32.mxu1 %v8468_v17  ;;  %v4579_v17 = vld [vmem:[#allocation3 + $0xe2] sm:$0xff] }
 0x399   : > { %6577 = vmatmul.mubr.f32.vlgmr.msra.gmra.mrb[18].mxu1 %v8478_v21  ;;  %v8880_v21 = vld [vmem:[%s8984_s6] ss:$0 sm:$0xff] }
 0x39a   : > { %6579 = vmatprep.mubr.f32.mxu1 %v8480_v23 }
 0x39d   : > { %6580 = vmatmul.mubr.f32.gmra.mrb[20].mxu1 %v8490_v29 }
 0x39e   : > { %6582 = vmatprep.mubr.f32.mxu1 %v8492_v30 }
 0x3a1   : > { %6583 = vmatmul.mubr.f32.gmra.mrb[22].mxu1 %v8502_v37 }
 0x3a2   : > { %6585 = vmatprep.mubr.f32.mxu1 %v8504_v38 }
 0x3a5   : > { %6586 = vmatmul.mubr.f32.gmra.mrb[24].mxu1 %v8514_v45 }
 0x3a6   : > { %6588 = vmatprep.mubr.f32.mxu1 %v8516_v49 }
 0x3a9   : > { %6589 = vmatmul.mubr.f32.gmra.mrb[26].mxu1 %v8526_v2 }
 0x3aa   : > { %6591 = vmatprep.mubr.f32.mxu1 %v8528_v5 }
 0x3ad   : > { %6592 = vmatmul.mubr.f32.gmra.mrb[28].mxu1 %v8538_v10 }
 0x3ae   : > { %6594 = vmatprep.mubr.f32.mxu1 %v8732_v9 }
 0x3b1   : > { %6595 = vmatmul.mubr.f32.gmra.mrb[30].mxu1 %v8742_v19 }
 0x3b2   : > { %6597 = vmatprep.mubr.f32.mxu1 %v4578_v62 }
 0x3b5   : > { %6598 = vmatmul.mubr.f32.gmra.mrb[32].mxu1 %v4579_v17 }
 0x46c   : > { %v6578_v23 = vpop.f32.mrb[18].mxu1 }
 0x46d   : > { %v4766_v29 = vadd.f32 %v6578_v23, %v8880_v21  ;;  %v4663_v30 = vpop.f32.mrb[19].mxu1 }
 0x46e   : > { %v4765_v37 = vadd.f32 %v8880_v21, %v4663_v30 }
 0x46f   : > { %v4782_v38 = vmax.f32 %v4766_v29, 0.0 }
 0x470   : > { %v4781_v45 = vmax.f32 %v4765_v37, 0.0  ;;  %v6581_v49 = vpop.f32.mrb[20].mxu1 }
 0x471   : > { %4798 = vst [vmem:[%s7595_s15 + $0x8] sm:$0xff] %v4782_v38  ;;  %v4768_v2 = vadd.f32 %v6581_v49, %v8880_v21  ;;  %v4673_v5 = vpop.f32.mrb[21].mxu1 }
 0x472   : > { %4797 = vst [vmem:[%s7595_s15] sm:$0xff] %v4781_v45  ;;  %v4767_v10 = vadd.f32 %v8880_v21, %v4673_v5 }
 0x473   : > { %v4784_v8 = vmax.f32 %v4768_v2, 0.0 }
 0x474   : > { %v4783_v60 = vmax.f32 %v4767_v10, 0.0  ;;  %v6584_v9 = vpop.f32.mrb[22].mxu1 }
 0x475   : > { %4800 = vst [vmem:[%s7595_s15 + $0x18] sm:$0xff] %v4784_v8  ;;  %v4770_v19 = vadd.f32 %v6584_v9, %v8880_v21  ;;  %v4683_v46 = vpop.f32.mrb[23].mxu1 }
 0x476   : > { %4799 = vst [vmem:[%s7595_s15 + $0x10] sm:$0xff] %v4783_v60  ;;  %v4769_v26 = vadd.f32 %v8880_v21, %v4683_v46 }
 0x477   : > { %v4786_v58 = vmax.f32 %v4770_v19, 0.0 }
 0x478   : > { %v4785_v50 = vmax.f32 %v4769_v26, 0.0  ;;  %v6587_v27 = vpop.f32.mrb[24].mxu1 }
 0x479   : > { %4802 = vst [vmem:[%s7595_s15 + $0x28] sm:$0xff] %v4786_v58  ;;  %v4772_v61 = vadd.f32 %v6587_v27, %v8880_v21  ;;  %v4693_v31 = vpop.f32.mrb[25].mxu1 }
 0x47a   : > { %4801 = vst [vmem:[%s7595_s15 + $0x20] sm:$0xff] %v4785_v50  ;;  %v4771_v32 = vadd.f32 %v8880_v21, %v4693_v31 }
 0x47b   : > { %v4788_v25 = vmax.f32 %v4772_v61, 0.0 }
 0x47c   : > { %v4787_v36 = vmax.f32 %v4771_v32, 0.0  ;;  %v6590_v39 = vpop.f32.mrb[26].mxu1 }
 0x47d   : > { %4804 = vst [vmem:[%s7595_s15 + $0x38] sm:$0xff] %v4788_v25  ;;  %v4774_v28 = vadd.f32 %v6590_v39, %v8880_v21  ;;  %v4703_v41 = vpop.f32.mrb[27].mxu1 }
 0x47e   : > { %4803 = vst [vmem:[%s7595_s15 + $0x30] sm:$0xff] %v4787_v36  ;;  %v4773_v42 = vadd.f32 %v8880_v21, %v4703_v41 }
 0x47f   : > { %v4790_v33 = vmax.f32 %v4774_v28, 0.0 }
 0x480   : > { %v4789_v47 = vmax.f32 %v4773_v42, 0.0  ;;  %v6593_v48 = vpop.f32.mrb[28].mxu1 }
 0x481   : > { %4806 = vst [vmem:[%s7595_s15 + $0x48] sm:$0xff] %v4790_v33  ;;  %v4776_v34 = vadd.f32 %v6593_v48, %v8880_v21  ;;  %v4713_v63 = vpop.f32.mrb[29].mxu1 }
 0x482   : > { %4805 = vst [vmem:[%s7595_s15 + $0x40] sm:$0xff] %v4789_v47  ;;  %v4775_v35 = vadd.f32 %v8880_v21, %v4713_v63 }
 0x483   : > { %v4792_v54 = vmax.f32 %v4776_v34, 0.0 }
 0x484   : > { %v4791_v40 = vmax.f32 %v4775_v35, 0.0  ;;  %v6596_v43 = vpop.f32.mrb[30].mxu1 }
 0x485   : > { %4808 = vst [vmem:[%s7595_s15 + $0x58] sm:$0xff] %v4792_v54  ;;  %v4778_v6 = vadd.f32 %v6596_v43, %v8880_v21  ;;  %v4723_v7 = vpop.f32.mrb[31].mxu1 }
 0x486   : > { %4807 = vst [vmem:[%s7595_s15 + $0x50] sm:$0xff] %v4791_v40  ;;  %v4777_v44 = vadd.f32 %v8880_v21, %v4723_v7 }
 0x487   : > { %v4794_v52 = vmax.f32 %v4778_v6, 0.0 }
 0x488   : > { %v4793_v59 = vmax.f32 %v4777_v44, 0.0  ;;  %v6599_v53 = vpop.f32.mrb[32].mxu1 }
 0x489   : > { %4810 = vst [vmem:[%s7595_s15 + $0x68] sm:$0xff] %v4794_v52  ;;  %v4780_v55 = vadd.f32 %v6599_v53, %v8880_v21  ;;  %v4733_v51 = vpop.f32.mrb[33].mxu1 }
 0x48a   : > { %4809 = vst [vmem:[%s7595_s15 + $0x60] sm:$0xff] %v4793_v59  ;;  %v4779_v13 = vadd.f32 %v8880_v21, %v4733_v51 }
 0x48b   : > { %v4796_v0 = vmax.f32 %v4780_v55, 0.0 }
 0x48c   : > { %v4795_v1 = vmax.f32 %v4779_v13, 0.0 }
 0x48d   : > { %4812 = vst [vmem:[%s7595_s15 + $0x78] sm:$0xff] %v4796_v0 }
 0x48e   : > { %4811 = vst [vmem:[%s7595_s15 + $0x70] sm:$0xff] %v4795_v1 }
 0x48f   : > { %7269 = shalt.err (!%p7266_p2)
}
 0x490   : > { %s7270_s15 = scalar_lea.hbm %s8918_s20, 2048  ;;  %s7274_s26 = scalar_lea.hbm %s8985_s7, 8192 }
 0x491   : > { %p7271_p4 = scmp.ne.s32.totalorder %s8918_s20, %s7270_s15  ;;  %p7275_p7 = scmp.lt.u32.totalorder %s8918_s20, %s8985_s7 }
 0x492   : > { %p7276_p9 = scmp.lt.u32.totalorder %s7274_s26, %s7270_s15  ;;  %p7278_p11 = scmp.lt.u32.totalorder %s7270_s15, %s8918_s20 }
 0x493   : > { %p7272_p5 = pnand %p7271_p4, %p7451_p3 }
 0x494   : > { %p7277_p10 = por %p7276_p9, %p7275_p7 }
 0x495   : > { %p7273_p6 = pneg %p7272_p5 }
 0x496   : > { %p7279_p12 = por %p7278_p11, %p7277_p10 }
 0x498   : > { %p7280_p13 = pnand %p7279_p12, %p7273_p6 }
 0x49a   : > { %7283 = shalt.err (!%p7280_p13)
}
 0x49b   : > { %s7358_s19 = smov 128   ;;  %s7359_s22 = smov 8  }
 0x49c   : > { %7178 = dma.vmem_to_hbm [thread:$0]  (%p7451_p3), %s8920_s28, 2048, %s8918_s20, %s8926_s10, %s7358_s19, %s7358_s19, %s7359_s22  }
 0x49d PF: > { %p7184_p0 = scmp.ge.s32.totalorder %s7350_s8, 2  ;;  %s4845_s27 = sand.u32 1, %s7322_s24  }
 0x49e   : > { %s4846_s11 = scalar_lea.sflag [#allocation5], %s4845_s27 }
 0x49f   : > { %p7181_p1 = pnand %p7184_p0, %p7460_p8 }
 0x4a1   : > { %7317 = dma.done.wait (!%p7181_p1), %s4846_s11, 2048  }
 0x4a2   : > { %7319 = vsyncadd (!%p7181_p1), %s4846_s11, 4294965248  ;;  %s20_s8 = sadd.s32 1, %s7350_s8   ;;  %s9007_s21 = sld [smem:[#allocation7_spill]] }
 0x4a3   : > { %p17_p2 = scmp.ge.s32.totalorder %s20_s8, 6   ;;  %s9008_s26 = sld [smem:[#allocation13_spill]] }
 0x4a4   : > { %s9009_s27 = sld [smem:[#allocation8_spill]]  ;;  %s9010_s28 = sld [smem:[#allocation9_spill]] }
 0x4a5   : > { %s9011_s29 = sld [smem:[#allocation10_spill]]  ;;  %s9012_s30 = sld [smem:[#allocation11_spill]] }
 0x4a6   : > { %s9013_s24 = smov %s7326_s25  ;;  %19 = sbr.rel (!%p17_p2) target bundleno = 7 (0x7), region = 136 }
 0x4a8   : > { %s9014_s25 = smov %s9007_s21 }
 0x4ad   :  { %4851 = vsyncpa [#allocation5], 1 }
 0x4ae   :  { %4853 = vsyncpa [#allocation5 + $0x1], 1 }

</bundles_post_ra>
